<compile_context>
chip_gen: v7x
topology: tpu7x:2x2x1
jax: 0.10.0
libtpu: 0.0.40
codegen_flags: <defaults>
</compile_context>

<pallas_src>
import jax
import jax.numpy as jnp
from jax import lax
from jax.experimental import pallas as pl
from jax.experimental.pallas import tpu as pltpu

BN_EPS = 1e-5
LANES = 128
SUBLANE_BF16 = 16  # bf16 sublane pack granule

_VMEM_SPEC = pl.BlockSpec(memory_space=pltpu.MemorySpace.VMEM)
_SMEM_SPEC = pl.BlockSpec(memory_space=pltpu.MemorySpace.SMEM)


def _round_up(n, m):
    return ((n + m - 1) // m) * m


# ----------------------------------------------------------------------------
# Kernel 1: single fused block (small batches, whole problem VMEM-resident)
# ----------------------------------------------------------------------------
def _dnn_fused_kernel(scal_ref, x_ref, w1_ref, small_ref, w2_ref, b2_ref, out_ref):
    n = scal_ref[0]                                   # true batch size
    pad_f = scal_ref[1].astype(jnp.float32)           # number of padded rows
    inv_n = 1.0 / n.astype(jnp.float32)

    b1 = small_ref[0:1, :]
    gamma = small_ref[1:2, :]
    beta = small_ref[2:3, :]

    # layer1: Linear(784->512), bf16 operands, f32 accumulation on the MXU.
    h = jnp.dot(x_ref[...], w1_ref[...],
                preferred_element_type=jnp.float32) + b1          # (Bp,512) f32

    # BatchNorm1d training-mode stats over the TRUE batch only.
    # Padded x rows are exactly zero -> their h rows are exactly b1, so the
    # mean is corrected algebraically (no per-row mask multiply needed).
    mean = (jnp.sum(h, axis=0, keepdims=True) - pad_f * b1) * inv_n
    d = h - mean                                                   # reused
    rows = lax.broadcasted_iota(jnp.int32, (h.shape[0], 1), 0)
    var = jnp.sum(jnp.where(rows < n, d * d, 0.0),
                  axis=0, keepdims=True) * inv_n                   # biased var

    # Fused affine + ReLU: FMA + max on the VPU, rsqrt on the EUP.
    scale = gamma * lax.rsqrt(var + BN_EPS)
    shift = beta - mean * scale
    a = jnp.maximum(h * scale + shift, 0.0)

    # layer2: Linear(512->10), output padded to 128 lane-dense columns.
    out_ref[...] = jnp.dot(a.astype(jnp.bfloat16), w2_ref[...],
                           preferred_element_type=jnp.float32) + b2_ref[...]


# ----------------------------------------------------------------------------
# Kernels 2a/2b: gridded two-pass pipeline (large batches)
# ----------------------------------------------------------------------------
def _stage1_kernel(x_ref, w1_ref, small_ref, h_ref, stats_ref):
    """Per batch-tile: h = x@w1 + b1, accumulate sum(h) and sum(h*h)."""
    @pl.when(pl.program_id(0) == 0)
    def _():
        stats_ref[...] = jnp.zeros_like(stats_ref)

    h = jnp.dot(x_ref[...], w1_ref[...],
                preferred_element_type=jnp.float32) + small_ref[0:1, :]
    h_ref[...] = h
    # Raw sums over ALL rows (including pad rows); corrected exactly in pass 2.
    stats_ref[0:1, :] += jnp.sum(h, axis=0, keepdims=True)
    stats_ref[1:2, :] += jnp.sum(h * h, axis=0, keepdims=True)


def _stage2_kernel(scal_ref, h_ref, stats_ref, small_ref, w2_ref, b2_ref, out_ref):
    """Per batch-tile: BN-apply + ReLU + layer2 using global stats."""
    n_f = scal_ref[0].astype(jnp.float32)
    pad_f = scal_ref[1].astype(jnp.float32)
    inv_n = 1.0 / n_f

    b1 = small_ref[0:1, :]
    gamma = small_ref[1:2, :]
    beta = small_ref[2:3, :]

    # Remove the exact contribution of zero-padded rows (h == b1 there).
    sum_h = stats_ref[0:1, :] - pad_f * b1
    sum_hh = stats_ref[1:2, :] - pad_f * (b1 * b1)
    mean = sum_h * inv_n
    var = jnp.maximum(sum_hh * inv_n - mean * mean, 0.0)          # biased var

    scale = gamma * lax.rsqrt(var + BN_EPS)
    shift = beta - mean * scale
    a = jnp.maximum(h_ref[...] * scale + shift, 0.0)

    out_ref[...] = jnp.dot(a.astype(jnp.bfloat16), w2_ref[...],
                           preferred_element_type=jnp.float32) + b2_ref[...]


# ----------------------------------------------------------------------------
# Host-side wrappers
# ----------------------------------------------------------------------------
def prepare_params(params):
    """One-time parameter preparation (hoisted out of the forward path)."""
    w1, b1, gamma, beta, w2, b2 = params
    K, H = w1.shape            # 784, 512
    C = w2.shape[1]            # 10
    K_pad = _round_up(K, LANES)   # 896
    C_pad = _round_up(C, LANES)   # 128

    w1_p = jnp.zeros((K_pad, H), jnp.bfloat16).at[:K, :].set(w1.astype(jnp.bfloat16))
    w2_p = jnp.zeros((H, C_pad), jnp.bfloat16).at[:, :C].set(w2.astype(jnp.bfloat16))
    b2_p = jnp.zeros((1, C_pad), jnp.float32).at[:, :C].set(b2.astype(jnp.float32))
    # Pack the small f32 params into one array (fewer DMA descriptors):
    # row 0 = b1, row 1 = gamma, row 2 = beta.
    small = jnp.concatenate([b1.astype(jnp.float32),
                             gamma.astype(jnp.float32),
                             beta.astype(jnp.float32)], axis=0)    # (3, 512)
    return dict(w1=w1_p, w2=w2_p, b2=b2_p, small=small,
                K=K, H=H, C=C, K_pad=K_pad, C_pad=C_pad)


def dnn_forward(x_nchw, prepared, *, grid_threshold=512, tile_b=256,
                force_grid=False):
    """x_nchw: (B, 1, 28, 28) float32 -> logits (B, 10) float32."""
    B = x_nchw.shape[0]
    K, H, C = prepared["K"], prepared["H"], prepared["C"]
    K_pad, C_pad = prepared["K_pad"], prepared["C_pad"]
    w1_p, small = prepared["w1"], prepared["small"]
    w2_p, b2_p = prepared["w2"], prepared["b2"]

    use_grid = force_grid or B > grid_threshold
    granule = tile_b if use_grid else SUBLANE_BF16
    B_pad = _round_up(B, granule)

    # Single wrapper-side pad of x: batch -> B_pad rows, contraction 784 -> 896.
    # TODO(synk): the K pad (784->896) could be dropped and left to Mosaic's
    # lane-tail handling; kept explicit since the batch pad forces this copy anyway.
    x_flat = x_nchw.reshape(B, -1).astype(jnp.bfloat16)
    x_p = jnp.zeros((B_pad, K_pad), jnp.bfloat16).at[:B, :K].set(x_flat)

    # [true batch size, number of padded rows] as data -> no recompile per B
    # when the padded shape is shared.
    scal = jnp.array([B, B_pad - B], jnp.int32)

    if not use_grid:
        # Small batch: one fused, fully VMEM-resident kernel (<< 32 MiB here).
        out_p = pl.pallas_call(
            _dnn_fused_kernel,
            out_shape=jax.ShapeDtypeStruct((B_pad, C_pad), jnp.float32),
            in_specs=[_SMEM_SPEC, _VMEM_SPEC, _VMEM_SPEC, _VMEM_SPEC,
                      _VMEM_SPEC, _VMEM_SPEC],
            out_specs=_VMEM_SPEC,
            compiler_params=pltpu.CompilerParams(
                vmem_limit_bytes=32 * 1024 * 1024),
        )(scal, x_p, w1_p, small, w2_p, b2_p)
        return out_p[:B, :C]

    # Large batch: gridded, weight-resident two-pass pipeline.
    nt = B_pad // tile_b

    # Pass 1: layer1 matmul per tile + global sum / sum-of-squares accumulation.
    h_full, stats = pl.pallas_call(
        _stage1_kernel,
        grid=(nt,),
        in_specs=[
            pl.BlockSpec((tile_b, K_pad), lambda i: (i, 0)),
            pl.BlockSpec((K_pad, H), lambda i: (0, 0)),
            pl.BlockSpec((3, H), lambda i: (0, 0)),
        ],
        out_specs=[
            pl.BlockSpec((tile_b, H), lambda i: (i, 0)),
            pl.BlockSpec((2, H), lambda i: (0, 0)),
        ],
        out_shape=(jax.ShapeDtypeStruct((B_pad, H), jnp.float32),
                   jax.ShapeDtypeStruct((2, H), jnp.float32)),
        compiler_params=pltpu.CompilerParams(
            dimension_semantics=("arbitrary",),
            vmem_limit_bytes=32 * 1024 * 1024),
    )(x_p, w1_p, small)

    # Pass 2: BN-apply + ReLU + layer2, batch tiles independent ("parallel").
    out_p = pl.pallas_call(
        _stage2_kernel,
        out_shape=jax.ShapeDtypeStruct((B_pad, C_pad), jnp.float32),
        grid_spec=pltpu.PrefetchScalarGridSpec(
            num_scalar_prefetch=1,
            grid=(nt,),
            in_specs=[
                pl.BlockSpec((tile_b, H), lambda i, s: (i, 0)),
                pl.BlockSpec((2, H), lambda i, s: (0, 0)),
                pl.BlockSpec((3, H), lambda i, s: (0, 0)),
                pl.BlockSpec((H, C_pad), lambda i, s: (0, 0)),
                pl.BlockSpec((1, C_pad), lambda i, s: (0, 0)),
            ],
            out_specs=pl.BlockSpec((tile_b, C_pad), lambda i, s: (i, 0)),
        ),
        compiler_params=pltpu.CompilerParams(
            dimension_semantics=("parallel",),
            vmem_limit_bytes=32 * 1024 * 1024),
    )(scal, h_full, stats, small, w2_p, b2_p)
    return out_p[:B, :C]


# ----------------------------------------------------------------------------
# Parameters & references
# ----------------------------------------------------------------------------
def init_params(key):
    """Deterministic synthetic parameters with the module's shapes (f32)."""
    k1, k2, k3, k4 = jax.random.split(key, 4)
    lim1 = 1.0 / jnp.sqrt(784.0)
    w1 = jax.random.uniform(k1, (784, 512), jnp.float32, -lim1, lim1)
    b1 = jax.random.uniform(k2, (1, 512), jnp.float32, -lim1, lim1)
    gamma = jnp.ones((1, 512), jnp.float32)
    beta = jnp.zeros((1, 512), jnp.float32)
    lim2 = 1.0 / jnp.sqrt(512.0)
    w2 = jax.random.uniform(k3, (512, 10), jnp.float32, -lim2, lim2)
    b2 = jax.random.uniform(k4, (1, 10), jnp.float32, -lim2, lim2)
    return (w1, b1, gamma, beta, w2, b2)


def reference_forward_f32(x_nchw, params):
    """Pure-f32 JAX reference mirroring the PyTorch forward (training-mode BN)."""
    w1, b1, gamma, beta, w2, b2 = params
    x = x_nchw.reshape(x_nchw.shape[0], -1)
    h = x @ w1 + b1
    mean = h.mean(axis=0, keepdims=True)
    var = ((h - mean) ** 2).mean(axis=0, keepdims=True)
    h = (h - mean) / jnp.sqrt(var + BN_EPS) * gamma + beta
    h = jnp.maximum(h, 0.0)
    return h @ w2 + b2


def reference_forward_mixed(x_nchw, params):
    """Reference with the kernel's dtype scheme (bf16 matmuls, f32 accumulate)."""
    w1, b1, gamma, beta, w2, b2 = params
    x = x_nchw.reshape(x_nchw.shape[0], -1).astype(jnp.bfloat16)
    h = jnp.dot(x, w1.astype(jnp.bfloat16),
                preferred_element_type=jnp.float32) + b1
    mean = h.mean(axis=0, keepdims=True)
    var = ((h - mean) ** 2).mean(axis=0, keepdims=True)
    scale = gamma * lax.rsqrt(var + BN_EPS)
    a = jnp.maximum(h * scale + (beta - mean * scale), 0.0)
    return jnp.dot(a.astype(jnp.bfloat16), w2.astype(jnp.bfloat16),
                   preferred_element_type=jnp.float32) + b2


if __name__ == "__main__":
    key = jax.random.PRNGKey(0)
    k_params, k_x1, k_x2 = jax.random.split(key, 3)
    params = init_params(k_params)
    prepared = prepare_params(params)   # one-time weight cast/pad (hoisted)

    # --- Path 1: small batch -> single fused kernel, B padded only to 16 ---
    B1 = 8
    x1 = jax.random.normal(k_x1, (B1, 1, 28, 28), jnp.float32)
    out1 = jax.block_until_ready(dnn_forward(x1, prepared))
    assert out1.shape == (B1, 10) and out1.dtype == jnp.float32
    ref1_m = reference_forward_mixed(x1, params)
    assert jnp.allclose(out1, ref1_m, atol=1e-3, rtol=1e-3), float(
        jnp.max(jnp.abs(out1 - ref1_m)))
    ref1_f = reference_forward_f32(x1, params)
    assert jnp.allclose(out1, ref1_f, atol=5e-2, rtol=5e-2), float(
        jnp.max(jnp.abs(out1 - ref1_f)))

    # --- Path 2: gridded two-pass pipeline (forced at a modest size) ---
    B2 = 200
    x2 = jax.random.normal(k_x2, (B2, 1, 28, 28), jnp.float32)
    out2 = jax.block_until_ready(
        dnn_forward(x2, prepared, force_grid=True, tile_b=128))
    assert out2.shape == (B2, 10) and out2.dtype == jnp.float32
    ref2_m = reference_forward_mixed(x2, params)
    assert jnp.allclose(out2, ref2_m, atol=1e-3, rtol=1e-3), float(
        jnp.max(jnp.abs(out2 - ref2_m)))
    ref2_f = reference_forward_f32(x2, params)
    assert jnp.allclose(out2, ref2_f, atol=5e-2, rtol=5e-2), float(
        jnp.max(jnp.abs(out2 - ref2_f)))

    print("KERNEL_OK")
</pallas_src>

<mosaic_0001>
module attributes {stable_mosaic.version = 11 : i64} {
  func.func @_dnn_fused_kernel(%arg0: memref<2xi32, #tpu.memory_space<smem>>, %arg1: memref<16x896xbf16, #tpu.memory_space<vmem>>, %arg2: memref<896x512xbf16, #tpu.memory_space<vmem>>, %arg3: memref<3x512xf32, #tpu.memory_space<vmem>>, %arg4: memref<512x128xbf16, #tpu.memory_space<vmem>>, %arg5: memref<1x128xf32, #tpu.memory_space<vmem>>, %arg6: memref<16x128xf32, #tpu.memory_space<vmem>>) attributes {dimension_semantics = [], scalar_prefetch = 0 : i64, scratch_operands = 0 : i64, tpu.core_type = #tpu.core_type<tc>} {
    %c0 = arith.constant 0 : index
    %0 = memref.load %arg0[%c0] : memref<2xi32, #tpu.memory_space<smem>>
    %c1 = arith.constant 1 : index
    %1 = memref.load %arg0[%c1] : memref<2xi32, #tpu.memory_space<smem>>
    %2 = arith.sitofp %1 : i32 to f32
    %3 = arith.sitofp %0 : i32 to f32
    %cst = arith.constant 1.000000e+00 : f32
    %4 = arith.divf %cst, %3 : f32
    %c0_0 = arith.constant 0 : index
    %c0_1 = arith.constant 0 : index
    %5 = vector.load %arg3[%c0_0, %c0_1] : memref<3x512xf32, #tpu.memory_space<vmem>>, vector<1x512xf32>
    %c1_2 = arith.constant 1 : index
    %c0_3 = arith.constant 0 : index
    %6 = vector.load %arg3[%c1_2, %c0_3] : memref<3x512xf32, #tpu.memory_space<vmem>>, vector<1x512xf32>
    %c2 = arith.constant 2 : index
    %c0_4 = arith.constant 0 : index
    %7 = vector.load %arg3[%c2, %c0_4] : memref<3x512xf32, #tpu.memory_space<vmem>>, vector<1x512xf32>
    %c0_5 = arith.constant 0 : index
    %c0_6 = arith.constant 0 : index
    %8 = vector.load %arg1[%c0_5, %c0_6] : memref<16x896xbf16, #tpu.memory_space<vmem>>, vector<16x896xbf16>
    %c0_7 = arith.constant 0 : index
    %c0_8 = arith.constant 0 : index
    %9 = vector.load %arg2[%c0_7, %c0_8] : memref<896x512xbf16, #tpu.memory_space<vmem>>, vector<896x512xbf16>
    %cst_9 = arith.constant dense<0.000000e+00> : vector<16x512xf32>
    %10 = tpu.matmul %8, %9, %cst_9 {dimension_numbers = #tpu.dot_dimension_numbers<[1], [0], [0], [1], [0, 0, 1, 1], [], []>} : vector<16x896xbf16>, vector<896x512xbf16>, vector<16x512xf32> -> vector<16x512xf32>
    %11 = vector.broadcast %5 : vector<1x512xf32> to vector<16x512xf32>
    %12 = arith.addf %10, %11 : vector<16x512xf32>
    %cst_10 = arith.constant dense<0.000000e+00> : vector<512xf32>
    %13 = vector.multi_reduction <add>, %12, %cst_10 [0] : vector<16x512xf32> to vector<512xf32>
    %14 = vector.shape_cast %13 : vector<512xf32> to vector<1x512xf32>
    %15 = vector.broadcast %2 : f32 to vector<1x512xf32>
    %16 = arith.mulf %15, %5 : vector<1x512xf32>
    %17 = arith.subf %14, %16 : vector<1x512xf32>
    %18 = vector.broadcast %4 : f32 to vector<1x512xf32>
    %19 = arith.mulf %17, %18 : vector<1x512xf32>
    %20 = vector.broadcast %19 : vector<1x512xf32> to vector<16x512xf32>
    %21 = arith.subf %12, %20 : vector<16x512xf32>
    %22 = tpu.iota {dimensions = array<i32: 0>} : vector<16x1xi32>
    %23 = vector.broadcast %0 : i32 to vector<16x1xi32>
    %24 = arith.cmpi slt, %22, %23 : vector<16x1xi32>
    %25 = arith.mulf %21, %21 : vector<16x512xf32>
    %cst_11 = arith.constant 0.000000e+00 : f32
    %26 = vector.shape_cast %24 : vector<16x1xi1> to vector<16x1xi1>
    %27 = vector.broadcast %26 : vector<16x1xi1> to vector<16x512xi1>
    %28 = vector.broadcast %cst_11 : f32 to vector<16x512xf32>
    %29 = arith.select %27, %25, %28 : vector<16x512xi1>, vector<16x512xf32>
    %cst_12 = arith.constant dense<0.000000e+00> : vector<512xf32>
    %30 = vector.multi_reduction <add>, %29, %cst_12 [0] : vector<16x512xf32> to vector<512xf32>
    %31 = vector.shape_cast %30 : vector<512xf32> to vector<1x512xf32>
    %32 = vector.broadcast %4 : f32 to vector<1x512xf32>
    %33 = arith.mulf %31, %32 : vector<1x512xf32>
    %cst_13 = arith.constant 9.99999974E-6 : f32
    %34 = vector.broadcast %cst_13 : f32 to vector<1x512xf32>
    %35 = arith.addf %33, %34 : vector<1x512xf32>
    %36 = math.rsqrt %35 : vector<1x512xf32>
    %37 = arith.mulf %6, %36 : vector<1x512xf32>
    %38 = arith.mulf %19, %37 : vector<1x512xf32>
    %39 = arith.subf %7, %38 : vector<1x512xf32>
    %40 = vector.broadcast %37 : vector<1x512xf32> to vector<16x512xf32>
    %41 = arith.mulf %12, %40 : vector<16x512xf32>
    %42 = vector.broadcast %39 : vector<1x512xf32> to vector<16x512xf32>
    %43 = arith.addf %41, %42 : vector<16x512xf32>
    %cst_14 = arith.constant 0.000000e+00 : f32
    %44 = vector.broadcast %cst_14 : f32 to vector<16x512xf32>
    %45 = arith.maximumf %43, %44 : vector<16x512xf32>
    %46 = arith.truncf %45 : vector<16x512xf32> to vector<16x512xbf16>
    %c0_15 = arith.constant 0 : index
    %c0_16 = arith.constant 0 : index
    %47 = vector.load %arg4[%c0_15, %c0_16] : memref<512x128xbf16, #tpu.memory_space<vmem>>, vector<512x128xbf16>
    %cst_17 = arith.constant dense<0.000000e+00> : vector<16x128xf32>
    %48 = tpu.matmul %46, %47, %cst_17 {dimension_numbers = #tpu.dot_dimension_numbers<[1], [0], [0], [1], [0, 0, 1, 1], [], []>} : vector<16x512xbf16>, vector<512x128xbf16>, vector<16x128xf32> -> vector<16x128xf32>
    %c0_18 = arith.constant 0 : index
    %c0_19 = arith.constant 0 : index
    %49 = vector.load %arg5[%c0_18, %c0_19] : memref<1x128xf32, #tpu.memory_space<vmem>>, vector<1x128xf32>
    %50 = vector.broadcast %49 : vector<1x128xf32> to vector<16x128xf32>
    %51 = arith.addf %48, %50 : vector<16x128xf32>
    %c0_20 = arith.constant 0 : index
    %c0_21 = arith.constant 0 : index
    %52 = vector.load %arg6[%c0_20, %c0_21] : memref<16x128xf32, #tpu.memory_space<vmem>>, vector<16x128xf32>
    tpu.vector_store %arg6[%c0_20, %c0_21], %51 {strides = array<i32>} : memref<16x128xf32, #tpu.memory_space<vmem>>, vector<16x128xf32>,
    return
  }
}

</mosaic_0001>

<bundles_post_ra>
// kernel: tpu_custom_call.1
= control target key start
LH: loop header
LB: loop body
LE: loop exit
PB: predicated region body
PF: predicated region fallthrough
CT: control target
= control target key end

     0   :  { %11 = vsyncpa [#allocation5], 0  ;;  %s3642_s0 = inlined_call_operand.hbm [shape: s32[2], index: 0, kind: input, shape index: {}]   ;;  %s3643_s1 = inlined_call_operand.hbm [shape: bf16[16,896], index: 1, kind: input, shape index: {}]   ;;  %s3644_s2 = inlined_call_operand.hbm [shape: bf16[896,512], index: 2, kind: input, shape index: {}]   ;;  %s3645_s3 = inlined_call_operand.hbm [shape: f32[3,512], index: 3, kind: input, shape index: {}]   ;;  %s3646_s4 = inlined_call_operand.hbm [shape: bf16[512,128], index: 4, kind: input, shape index: {}]   ;;  %s3647_s5 = inlined_call_operand.vmem [shape: f32[1,128], index: 5, kind: input, shape index: {}]   ;;  %s3648_s6 = inlined_call_operand.hbm [shape: f32[16,128], index: 6, kind: output, shape index: {}]  }
   0x1   :  { %12 = vsyncpa [#allocation3], 0 }
   0x2   :  { %13 = vsyncpa [#allocation8], 0 }
   0x3   :  { %14 = vsyncpa [#allocation11], 0 }
   0x4   :  { %15 = vsyncpa [#allocation4], 0  ;;  %s3382_s21 = smov [#allocation7]   ;;  %s3252_s25 = scalar_lea.hbm %s3644_s2, 28672 }
   0x5   :  { %s41_s22 = sshll.u32 %s3382_s21, 4  ;;  %p3253_p0 = scmp.ne.s32.totalorder %s3644_s2, %s3252_s25  ;;  %s42_s22 = int_to_ptr.vmem [resolvable:$true] %s41_s22 }
   0x6   :  { %p3256_p1 = scmp.lt.u32.totalorder %s3252_s25, %s3644_s2 }
   0x8   :  { %p3258_p2 = pnand %p3256_p1, %p3253_p0 }
   0xa   :  { %3261 = shalt.err (!%p3258_p2)
}
   0xb   :  { %s3262_s30 = scalar_lea.vmem %s42_s22, 28672  ;;  %p3267_p4 = scmp.lt.s32.totalorder %s42_s22, %s42_s22 }
   0xc   :  { %p3263_p3 = scmp.ne.s32.totalorder %s42_s22, %s3262_s30  ;;  %p3268_p5 = scmp.lt.s32.totalorder %s3262_s30, %s3262_s30 }
   0xe   :  { %p3269_p6 = por %p3268_p5, %p3267_p4 }
  0x10   :  { %p3270_p7 = pnand %p3269_p6, %p3263_p3 }
  0x12   :  { %3273 = shalt.err (!%p3270_p7)
}
  0x13   :  { %s3383_s7 = smov 256   ;;  %s3384_s8 = smov 16  }
  0x14   :  { %47 = dma.hbm_to_vmem [thread:$0]  %s3644_s2, 28672, %s42_s22, [#allocation8], %s3383_s7, %s3383_s7, %s3384_s8  }
  0x15   :  { %s3274_s13 = scalar_lea.hbm %s3642_s0, 16 }
  0x16   :  { %p3275_p8 = scmp.ne.s32.totalorder %s3642_s0, %s3274_s13  ;;  %p3278_p9 = scmp.lt.u32.totalorder %s3274_s13, %s3642_s0 }
  0x18   :  { %p3280_p10 = pnand %p3278_p9, %p3275_p8 }
  0x1a   :  { %3283 = shalt.err (!%p3280_p10)
}
  0x1b   :  { %s3385_s18 = smov [#allocation2]   ;;  %s3386_s2 = smov [#allocation6]  }
  0x1c   :  { %23 = dma.hbm_to_smem %s3642_s0, 16, %s3385_s18, [#allocation5]  }
  0x1d   :  { %s29_s21 = sshll.u32 %s3386_s2, 4  ;;  %s3284_s24 = scalar_lea.hbm %s3643_s1, 896  ;;  %s30_s21 = int_to_ptr.vmem [resolvable:$true] %s29_s21 }
  0x1e   :  { %p3285_p11 = scmp.ne.s32.totalorder %s3643_s1, %s3284_s24  ;;  %p3288_p12 = scmp.lt.u32.totalorder %s3284_s24, %s3643_s1 }
  0x20   :  { %p3290_p13 = pnand %p3288_p12, %p3285_p11 }
  0x22   :  { %3293 = shalt.err (!%p3290_p13)
}
  0x23   :  { %s3294_s29 = scalar_lea.vmem %s30_s21, 896  ;;  %p3299_p1 = scmp.lt.s32.totalorder %s30_s21, %s30_s21 }
  0x24   :  { %p3295_p0 = scmp.ne.s32.totalorder %s30_s21, %s3294_s29  ;;  %p3300_p2 = scmp.lt.s32.totalorder %s3294_s29, %s3294_s29 }
  0x26   :  { %p3301_p3 = por %p3300_p2, %p3299_p1 }
  0x28   :  { %p3302_p4 = pnand %p3301_p3, %p3295_p0 }
  0x2a   :  { %3305 = shalt.err (!%p3302_p4)
}
  0x2b   :  { %s3387_s0 = smov 448   ;;  %s3388_s30 = smov 28  }
  0x2c   :  { %35 = dma.hbm_to_vmem [thread:$0]  %s3643_s1, 896, %s30_s21, [#allocation3], %s3387_s0, %s3387_s0, %s3388_s30  }
  0x2d   :  { %s3389_s9 = smov [#allocation9]   ;;  %s3390_s11 = smov [#allocation10]  }
  0x2e   :  { %s54_s10 = sshll.u32 %s3389_s9, 4  ;;  %s63_s12 = sshll.u32 %s3390_s11, 4  ;;  %s55_s10 = int_to_ptr.vmem [resolvable:$true] %s54_s10  ;;  %s64_s12 = int_to_ptr.vmem [resolvable:$true] %s63_s12 }
  0x2f   :  { %s3306_s15 = scalar_lea.hbm %s3645_s3, 256 }
  0x30   :  { %p3307_p5 = scmp.ne.s32.totalorder %s3645_s3, %s3306_s15  ;;  %p3310_p6 = scmp.lt.u32.totalorder %s3306_s15, %s3645_s3 }
  0x32   :  { %p3312_p7 = pnand %p3310_p6, %p3307_p5 }
  0x34   :  { %3315 = shalt.err (!%p3312_p7)
}
  0x35   :  { %s3316_s1 = scalar_lea.vmem %s55_s10, 256  ;;  %p3321_p9 = scmp.lt.s32.totalorder %s55_s10, %s55_s10 }
  0x36   :  { %p3317_p8 = scmp.ne.s32.totalorder %s55_s10, %s3316_s1  ;;  %p3322_p10 = scmp.lt.s32.totalorder %s3316_s1, %s3316_s1 }
  0x38   :  { %p3323_p11 = por %p3322_p10, %p3321_p9 }
  0x3a   :  { %p3324_p12 = pnand %p3323_p11, %p3317_p8 }
  0x3c   :  { %3327 = shalt.err (!%p3324_p12)
}
  0x3d   :  { %57 = dma.hbm_to_vmem [thread:$0]  %s3645_s3, 256, %s55_s10, [#allocation8]  }
  0x3e   :  { %s3328_s23 = scalar_lea.hbm %s3646_s4, 4096 }
  0x3f   :  { %p3329_p13 = scmp.ne.s32.totalorder %s3646_s4, %s3328_s23  ;;  %p3332_p0 = scmp.lt.u32.totalorder %s3328_s23, %s3646_s4 }
  0x41   :  { %p3334_p1 = pnand %p3332_p0, %p3329_p13 }
  0x43   :  { %3337 = shalt.err (!%p3334_p1)
}
  0x44   :  { %s3338_s28 = scalar_lea.vmem %s64_s12, 4096  ;;  %p3343_p3 = scmp.lt.s32.totalorder %s64_s12, %s64_s12 }
  0x45   :  { %p3339_p2 = scmp.ne.s32.totalorder %s64_s12, %s3338_s28  ;;  %p3344_p4 = scmp.lt.s32.totalorder %s3338_s28, %s3338_s28 }
  0x47   :  { %p3345_p5 = por %p3344_p4, %p3343_p3 }
  0x49   :  { %p3346_p6 = pnand %p3345_p5, %p3339_p2 }
  0x4b   :  { %3349 = shalt.err (!%p3346_p6)
}
  0x4c   :  { %s3391_s3 = smov 64   ;;  %s3392_s29 = smov 4  }
  0x4d   :  { %69 = dma.hbm_to_vmem [thread:$0]  %s3646_s4, 4096, %s64_s12, [#allocation11], %s3391_s3, %s3391_s3, %s3392_s29  }
  0x4e   :  { %3372 = dma.done.wait [#allocation5], 16  }
  0x4f   :  { %3373 = vsyncadd [#allocation5], 4294967280 }
  0x50   :  { %3374 = dma.done.wait [#allocation3], 896  }
  0x51   :  { %3375 = vsyncadd [#allocation3], 4294966400 }
  0x52   :  { %3376 = dma.done.wait [#allocation8], 28928  }
  0x53   :  { %3377 = vsyncadd [#allocation8], 4294938368 }
  0x54   :  { %3378 = dma.done.wait [#allocation11], 4096  }
  0x55   :  { %3379 = vsyncadd [#allocation11], 4294963200 }
  0x56   :  { %87 = sfence }
  0x57   :  { %v2864_v0 = vld [vmem:[#allocation7 + $0x4] ss:$16 sps:$4 sm:$0xff]   ;;  %v2866_v1 = vld [vmem:[#allocation7 + $0xc] ss:$16 sps:$4 sm:$0xff]   ;;  %v2868_v2 = vld [vmem:[#allocation7] ss:$16 sps:$4 sm:$0xff]  }
  0x58   :  { %1510 = vmatprep.subr.bf16.mxu0 %v2864_v0  ;;  %v2869_v3 = vld [vmem:[#allocation7 + $0x8] ss:$16 sps:$4 sm:$0xff]   ;;  %1682 = vmatprep.subr.bf16.mxu1 %v2866_v1  ;;  %v2870_v4 = vld [vmem:[#allocation7 + $0x24] ss:$16 sps:$4 sm:$0xff]   ;;  %v2872_v5 = vld [vmem:[#allocation7 + $0x2c] ss:$16 sps:$4 sm:$0xff]  }
  0x59   :  { %1511 = vmatpush1.bf16.msra.mxu0 %v2868_v2  ;;  %1683 = vmatpush1.bf16.msra.mxu1 %v2869_v3  ;;  %v2874_v6 = vld [vmem:[#allocation7 + $0x20] ss:$16 sps:$4 sm:$0xff]   ;;  %v2875_v7 = vld [vmem:[#allocation7 + $0x28] ss:$16 sps:$4 sm:$0xff]   ;;  %v2876_v8 = vld [vmem:[#allocation7 + $0x44] ss:$16 sps:$4 sm:$0xff]  }
  0x5a   :  { %1512 = vmatprep.subr.bf16.mxu0 %v2870_v4  ;;  %1684 = vmatprep.subr.bf16.mxu1 %v2872_v5  ;;  %v2878_v9 = vld [vmem:[#allocation7 + $0x4c] ss:$16 sps:$4 sm:$0xff]   ;;  %v2880_v10 = vld [vmem:[#allocation7 + $0x40] ss:$16 sps:$4 sm:$0xff]   ;;  %v2881_v11 = vld [vmem:[#allocation7 + $0x48] ss:$16 sps:$4 sm:$0xff]  }
  0x5b   :  { %v2882_v12 = vld [vmem:[#allocation7 + $0x64] ss:$16 sps:$4 sm:$0xff]   ;;  %v2884_v13 = vld [vmem:[#allocation7 + $0x6c] ss:$16 sps:$4 sm:$0xff]   ;;  %v2886_v14 = vld [vmem:[#allocation7 + $0x60] ss:$16 sps:$4 sm:$0xff]  }
  0x5c   :  { %v2887_v15 = vld [vmem:[#allocation7 + $0x68] ss:$16 sps:$4 sm:$0xff]   ;;  %v2888_v16 = vld [vmem:[#allocation7 + $0x84] ss:$16 sps:$4 sm:$0xff]   ;;  %v2890_v17 = vld [vmem:[#allocation7 + $0x8c] ss:$16 sps:$4 sm:$0xff]  }
  0x5d   :  { %1513 = vmatpush1.bf16.msra.mxu0 %v2874_v6  ;;  %1685 = vmatpush1.bf16.msra.mxu1 %v2875_v7  ;;  %v2892_v18 = vld [vmem:[#allocation7 + $0x80] ss:$16 sps:$4 sm:$0xff]   ;;  %v2893_v19 = vld [vmem:[#allocation7 + $0x88] ss:$16 sps:$4 sm:$0xff]   ;;  %v2894_v20 = vld [vmem:[#allocation7 + $0xa4] ss:$16 sps:$4 sm:$0xff]  }
  0x5e   :  { %1514 = vmatprep.subr.bf16.mxu0 %v2876_v8  ;;  %1686 = vmatprep.subr.bf16.mxu1 %v2878_v9  ;;  %v2896_v21 = vld [vmem:[#allocation7 + $0xac] ss:$16 sps:$4 sm:$0xff]   ;;  %v2898_v22 = vld [vmem:[#allocation7 + $0xa0] ss:$16 sps:$4 sm:$0xff]   ;;  %v2899_v23 = vld [vmem:[#allocation7 + $0xa8] ss:$16 sps:$4 sm:$0xff]  }
  0x5f   :  { %v2900_v24 = vld [vmem:[#allocation7 + $0xc4] ss:$16 sps:$4 sm:$0xff]   ;;  %v2902_v25 = vld [vmem:[#allocation7 + $0xcc] ss:$16 sps:$4 sm:$0xff]   ;;  %v2904_v26 = vld [vmem:[#allocation7 + $0xc0] ss:$16 sps:$4 sm:$0xff]  }
  0x60   :  { %v2905_v27 = vld [vmem:[#allocation7 + $0xc8] ss:$16 sps:$4 sm:$0xff]   ;;  %v2906_v28 = vld [vmem:[#allocation7 + $0xe4] ss:$16 sps:$4 sm:$0xff]   ;;  %v2908_v29 = vld [vmem:[#allocation7 + $0xec] ss:$16 sps:$4 sm:$0xff]  }
  0x61   :  { %1515 = vmatpush1.bf16.msra.mxu0 %v2880_v10  ;;  %1687 = vmatpush1.bf16.msra.mxu1 %v2881_v11  ;;  %v2910_v30 = vld [vmem:[#allocation7 + $0xe0] ss:$16 sps:$4 sm:$0xff]   ;;  %v2911_v31 = vld [vmem:[#allocation7 + $0xe8] ss:$16 sps:$4 sm:$0xff]   ;;  %v2912_v32 = vld [vmem:[#allocation7 + $0x104] ss:$16 sps:$4 sm:$0xff]  }
  0x62   :  { %1516 = vmatprep.subr.bf16.mxu0 %v2882_v12  ;;  %1688 = vmatprep.subr.bf16.mxu1 %v2884_v13  ;;  %v2914_v33 = vld [vmem:[#allocation7 + $0x10c] ss:$16 sps:$4 sm:$0xff]   ;;  %v2916_v34 = vld [vmem:[#allocation7 + $0x100] ss:$16 sps:$4 sm:$0xff]   ;;  %v2917_v35 = vld [vmem:[#allocation7 + $0x108] ss:$16 sps:$4 sm:$0xff]  }
  0x63   :  { %v2918_v36 = vld [vmem:[#allocation7 + $0x124] ss:$16 sps:$4 sm:$0xff]   ;;  %v2920_v37 = vld [vmem:[#allocation7 + $0x12c] ss:$16 sps:$4 sm:$0xff]   ;;  %v2922_v38 = vld [vmem:[#allocation7 + $0x120] ss:$16 sps:$4 sm:$0xff]  }
  0x64   :  { %v2923_v39 = vld [vmem:[#allocation7 + $0x128] ss:$16 sps:$4 sm:$0xff]   ;;  %v2924_v40 = vld [vmem:[#allocation7 + $0x144] ss:$16 sps:$4 sm:$0xff]   ;;  %v2926_v41 = vld [vmem:[#allocation7 + $0x14c] ss:$16 sps:$4 sm:$0xff]  }
  0x65   :  { %1517 = vmatpush1.bf16.msra.mxu0 %v2886_v14  ;;  %1689 = vmatpush1.bf16.msra.mxu1 %v2887_v15  ;;  %v2928_v42 = vld [vmem:[#allocation7 + $0x140] ss:$16 sps:$4 sm:$0xff]   ;;  %v2929_v43 = vld [vmem:[#allocation7 + $0x148] ss:$16 sps:$4 sm:$0xff]   ;;  %v2930_v44 = vld [vmem:[#allocation7 + $0x164] ss:$16 sps:$4 sm:$0xff]  }
  0x66   :  { %1518 = vmatprep.subr.bf16.mxu0 %v2888_v16  ;;  %1690 = vmatprep.subr.bf16.mxu1 %v2890_v17  ;;  %v2932_v45 = vld [vmem:[#allocation7 + $0x16c] ss:$16 sps:$4 sm:$0xff]   ;;  %v2934_v46 = vld [vmem:[#allocation7 + $0x160] ss:$16 sps:$4 sm:$0xff]   ;;  %v2935_v47 = vld [vmem:[#allocation7 + $0x168] ss:$16 sps:$4 sm:$0xff]  }
  0x67   :  { %v2962_v48 = vld [vmem:[#allocation6 + $0x4] ss:$28 sps:$4 sm:$0xff]   ;;  %v2936_v49 = vld [vmem:[#allocation7 + $0x184] ss:$16 sps:$4 sm:$0xff]   ;;  %v2940_v51 = vld [vmem:[#allocation7 + $0x180] ss:$16 sps:$4 sm:$0xff]  }
  0x68   :  { %v2938_v50 = vld [vmem:[#allocation7 + $0x18c] ss:$16 sps:$4 sm:$0xff]   ;;  %1542 = vmatprep.mubr.bf16.mxu0 %v2962_v48  ;;  %1714 = vmatprep.mubr.bf16.mxu1 %v2962_v48  ;;  %v2941_v52 = vld [vmem:[#allocation7 + $0x188] ss:$16 sps:$4 sm:$0xff]   ;;  %v2942_v53 = vld [vmem:[#allocation7 + $0x1a4] ss:$16 sps:$4 sm:$0xff]  }
  0x69   :  { %1519 = vmatpush1.bf16.msra.mxu0 %v2892_v18  ;;  %1691 = vmatpush1.bf16.msra.mxu1 %v2893_v19  ;;  %v2944_v54 = vld [vmem:[#allocation7 + $0x1ac] ss:$16 sps:$4 sm:$0xff]   ;;  %v2946_v55 = vld [vmem:[#allocation7 + $0x1a0] ss:$16 sps:$4 sm:$0xff]   ;;  %v2947_v56 = vld [vmem:[#allocation7 + $0x1a8] ss:$16 sps:$4 sm:$0xff]  }
  0x6a   :  { %1520 = vmatprep.subr.bf16.mxu0 %v2894_v20  ;;  %1692 = vmatprep.subr.bf16.mxu1 %v2896_v21  ;;  %v2948_v57 = vld [vmem:[#allocation7 + $0x1c4] ss:$16 sps:$4 sm:$0xff]   ;;  %v2950_v58 = vld [vmem:[#allocation7 + $0x1cc] ss:$16 sps:$4 sm:$0xff]   ;;  %v2952_v59 = vld [vmem:[#allocation7 + $0x1c0] ss:$16 sps:$4 sm:$0xff]  }
  0x6b   :  { %v2953_v60 = vld [vmem:[#allocation7 + $0x1c8] ss:$16 sps:$4 sm:$0xff]   ;;  %v2954_v61 = vld [vmem:[#allocation7 + $0x1e4] ss:$16 sps:$4 sm:$0xff]   ;;  %v2956_v62 = vld [vmem:[#allocation7 + $0x1ec] ss:$16 sps:$4 sm:$0xff]  }
  0x6c   :  { %v2958_v63 = vld [vmem:[#allocation7 + $0x1e0] ss:$16 sps:$4 sm:$0xff]   ;;  %v2959_v0 = vld [vmem:[#allocation7 + $0x1e8] ss:$16 sps:$4 sm:$0xff]   ;;  %v2965_v1 = vld [vmem:[#allocation7 + $0x204] ss:$16 sps:$4 sm:$0xff]  }
  0x6d   :  { %1521 = vmatpush1.bf16.msra.mxu0 %v2898_v22  ;;  %1693 = vmatpush1.bf16.msra.mxu1 %v2899_v23  ;;  %v2968_v2 = vld [vmem:[#allocation7 + $0x20c] ss:$16 sps:$4 sm:$0xff]   ;;  %v2960_v3 = vld [vmem:[#allocation6] ss:$28 sps:$4 sm:$0xff]   ;;  %v2963_v4 = vld [vmem:[#allocation7 + $0x200] ss:$16 sps:$4 sm:$0xff]  }
  0x6e   :  { %1522 = vmatprep.subr.bf16.mxu0 %v2900_v24  ;;  %1694 = vmatprep.subr.bf16.mxu1 %v2902_v25  ;;  %v2966_v5 = vld [vmem:[#allocation7 + $0x208] ss:$16 sps:$4 sm:$0xff]   ;;  %v2971_v6 = vld [vmem:[#allocation7 + $0x224] ss:$16 sps:$4 sm:$0xff]   ;;  %v2974_v7 = vld [vmem:[#allocation7 + $0x22c] ss:$16 sps:$4 sm:$0xff]  }
  0x6f   :  { %v2969_v8 = vld [vmem:[#allocation7 + $0x220] ss:$16 sps:$4 sm:$0xff]   ;;  %v2972_v9 = vld [vmem:[#allocation7 + $0x228] ss:$16 sps:$4 sm:$0xff]   ;;  %v2977_v10 = vld [vmem:[#allocation7 + $0x244] ss:$16 sps:$4 sm:$0xff]  }
  0x70   :  { %v2980_v11 = vld [vmem:[#allocation7 + $0x24c] ss:$16 sps:$4 sm:$0xff]   ;;  %v2975_v12 = vld [vmem:[#allocation7 + $0x240] ss:$16 sps:$4 sm:$0xff]   ;;  %v2978_v13 = vld [vmem:[#allocation7 + $0x248] ss:$16 sps:$4 sm:$0xff]  }
  0x71   :  { %1523 = vmatpush1.bf16.msra.mxu0 %v2904_v26  ;;  %1695 = vmatpush1.bf16.msra.mxu1 %v2905_v27  ;;  %v2983_v14 = vld [vmem:[#allocation7 + $0x264] ss:$16 sps:$4 sm:$0xff]   ;;  %v2986_v15 = vld [vmem:[#allocation7 + $0x26c] ss:$16 sps:$4 sm:$0xff]   ;;  %v2981_v16 = vld [vmem:[#allocation7 + $0x260] ss:$16 sps:$4 sm:$0xff]  }
  0x72   :  { %1524 = vmatprep.subr.bf16.mxu0 %v2906_v28  ;;  %1696 = vmatprep.subr.bf16.mxu1 %v2908_v29  ;;  %v2984_v17 = vld [vmem:[#allocation7 + $0x268] ss:$16 sps:$4 sm:$0xff]   ;;  %v2989_v18 = vld [vmem:[#allocation7 + $0x284] ss:$16 sps:$4 sm:$0xff]   ;;  %v2992_v19 = vld [vmem:[#allocation7 + $0x28c] ss:$16 sps:$4 sm:$0xff]  }
  0x73   :  { %v2987_v20 = vld [vmem:[#allocation7 + $0x280] ss:$16 sps:$4 sm:$0xff]   ;;  %v2990_v21 = vld [vmem:[#allocation7 + $0x288] ss:$16 sps:$4 sm:$0xff]   ;;  %v2995_v22 = vld [vmem:[#allocation7 + $0x2a4] ss:$16 sps:$4 sm:$0xff]  }
  0x74   :  { %v2998_v23 = vld [vmem:[#allocation7 + $0x2ac] ss:$16 sps:$4 sm:$0xff]   ;;  %v2993_v24 = vld [vmem:[#allocation7 + $0x2a0] ss:$16 sps:$4 sm:$0xff]   ;;  %v2996_v25 = vld [vmem:[#allocation7 + $0x2a8] ss:$16 sps:$4 sm:$0xff]  }
  0x75   :  { %1525 = vmatpush1.bf16.msra.mxu0 %v2910_v30  ;;  %1697 = vmatpush1.bf16.msra.mxu1 %v2911_v31  ;;  %v3001_v26 = vld [vmem:[#allocation7 + $0x2c4] ss:$16 sps:$4 sm:$0xff]   ;;  %v3004_v27 = vld [vmem:[#allocation7 + $0x2cc] ss:$16 sps:$4 sm:$0xff]   ;;  %v2999_v28 = vld [vmem:[#allocation7 + $0x2c0] ss:$16 sps:$4 sm:$0xff]  }
  0x76   :  { %1526 = vmatprep.subr.bf16.mxu0 %v2912_v32  ;;  %1698 = vmatprep.subr.bf16.mxu1 %v2914_v33  ;;  %v3002_v29 = vld [vmem:[#allocation7 + $0x2c8] ss:$16 sps:$4 sm:$0xff]   ;;  %v3061_v30 = vld [vmem:[#allocation6 + $0xc] ss:$28 sps:$4 sm:$0xff]   ;;  %v3010_v32 = vld [vmem:[#allocation7 + $0x2ec] ss:$16 sps:$4 sm:$0xff]  }
  0x77   :  { %v3007_v31 = vld [vmem:[#allocation7 + $0x2e4] ss:$16 sps:$4 sm:$0xff]   ;;  %v3005_v33 = vld [vmem:[#allocation7 + $0x2e0] ss:$16 sps:$4 sm:$0xff]   ;;  %s3493_s4 = sld [smem:[#allocation2]]  ;;  %s3498_s8 = sld [smem:[#allocation2 + $0x1]] }
  0x78   :  { %v3034_v48 = vld [vmem:[#allocation7 + $0x36c] ss:$16 sps:$4 sm:$0xff]   ;;  %s3395_s13 = smov [#allocation12]  }
  0x79   :  { %1527 = vmatpush1.bf16.msra.mxu0 %v2916_v34  ;;  %1699 = vmatpush1.bf16.msra.mxu1 %v2917_v35  ;;  %v3008_v34 = vld [vmem:[#allocation7 + $0x2e8] ss:$16 sps:$4 sm:$0xff]   ;;  %v3013_v35 = vld [vmem:[#allocation7 + $0x304] ss:$16 sps:$4 sm:$0xff]   ;;  %s2490_s14 = sshll.u32 %s3395_s13, 4  ;;  %s2491_s14 = int_to_ptr.vmem [resolvable:$true] %s2490_s14 }
  0x7a   :  { %1528 = vmatprep.subr.bf16.mxu0 %v2918_v36  ;;  %1700 = vmatprep.subr.bf16.mxu1 %v2920_v37  ;;  %v3016_v36 = vld [vmem:[#allocation7 + $0x30c] ss:$16 sps:$4 sm:$0xff]   ;;  %v3011_v37 = vld [vmem:[#allocation7 + $0x300] ss:$16 sps:$4 sm:$0xff]   ;;  %p3355_p8 = scmp.lt.s32.totalorder %s2491_s14, %s2491_s14 }
  0x7d   :  { %1529 = vmatpush1.bf16.msra.mxu0 %v2922_v38  ;;  %1701 = vmatpush1.bf16.msra.mxu1 %v2923_v39  ;;  %v3014_v38 = vld [vmem:[#allocation7 + $0x308] ss:$16 sps:$4 sm:$0xff]   ;;  %v3019_v39 = vld [vmem:[#allocation7 + $0x324] ss:$16 sps:$4 sm:$0xff]   ;;  %s92_s7 = scvt.s32.f32 %s3493_s4  ;;  %s91_s9 = scvt.s32.f32 %s3498_s8 }
  0x7e   :  { %1530 = vmatprep.subr.bf16.mxu0 %v2924_v40  ;;  %1702 = vmatprep.subr.bf16.mxu1 %v2926_v41  ;;  %v3022_v40 = vld [vmem:[#allocation7 + $0x32c] ss:$16 sps:$4 sm:$0xff]   ;;  %v3017_v41 = vld [vmem:[#allocation7 + $0x320] ss:$16 sps:$4 sm:$0xff]  }
  0x81   :  { %1531 = vmatpush1.bf16.msra.mxu0 %v2928_v42  ;;  %1703 = vmatpush1.bf16.msra.mxu1 %v2929_v43  ;;  %v3020_v42 = vld [vmem:[#allocation7 + $0x328] ss:$16 sps:$4 sm:$0xff]   ;;  %v3025_v43 = vld [vmem:[#allocation7 + $0x344] ss:$16 sps:$4 sm:$0xff]  }
  0x82   :  { %1532 = vmatprep.subr.bf16.mxu0 %v2930_v44  ;;  %1704 = vmatprep.subr.bf16.mxu1 %v2932_v45  ;;  %v3028_v44 = vld [vmem:[#allocation7 + $0x34c] ss:$16 sps:$4 sm:$0xff]   ;;  %v3023_v45 = vld [vmem:[#allocation7 + $0x340] ss:$16 sps:$4 sm:$0xff]  }
  0x85   :  { %1533 = vmatpush1.bf16.msra.mxu0 %v2934_v46  ;;  %1705 = vmatpush1.bf16.msra.mxu1 %v2935_v47  ;;  %v3026_v46 = vld [vmem:[#allocation7 + $0x348] ss:$16 sps:$4 sm:$0xff]   ;;  %v3031_v47 = vld [vmem:[#allocation7 + $0x364] ss:$16 sps:$4 sm:$0xff]  }
  0x86   :  { %1534 = vmatprep.subr.bf16.mxu0 %v2936_v49  ;;  %1706 = vmatprep.subr.bf16.mxu1 %v2938_v50  ;;  %v3029_v49 = vld [vmem:[#allocation7 + $0x360] ss:$16 sps:$4 sm:$0xff]   ;;  %v3032_v50 = vld [vmem:[#allocation7 + $0x368] ss:$16 sps:$4 sm:$0xff]  }
  0x89   :  { %1535 = vmatpush1.bf16.msra.mxu0 %v2940_v51  ;;  %1707 = vmatpush1.bf16.msra.mxu1 %v2941_v52  ;;  %v3037_v51 = vld [vmem:[#allocation7 + $0x384] ss:$16 sps:$4 sm:$0xff]   ;;  %v93_v52 = vstv %s92_s7 }
  0x8a   :  { %1536 = vmatprep.subr.bf16.mxu0 %v2942_v53  ;;  %1708 = vmatprep.subr.bf16.mxu1 %v2944_v54  ;;  %v3040_v53 = vld [vmem:[#allocation7 + $0x38c] ss:$16 sps:$4 sm:$0xff]   ;;  %3242 = vrcp.f32 %v93_v52  ;;  %v3035_v54 = vld [vmem:[#allocation7 + $0x380] ss:$16 sps:$4 sm:$0xff]  }
  0x8b   :  { %v3133_v52 = vld [vmem:[#allocation7 + $0x56c] ss:$16 sps:$4 sm:$0xff]  }
  0x8d   :  { %1537 = vmatpush1.bf16.msra.mxu0 %v2946_v55  ;;  %1709 = vmatpush1.bf16.msra.mxu1 %v2947_v56  ;;  %v3038_v55 = vld [vmem:[#allocation7 + $0x388] ss:$16 sps:$4 sm:$0xff]   ;;  %v3043_v56 = vld [vmem:[#allocation7 + $0x3a4] ss:$16 sps:$4 sm:$0xff]  }
  0x8e   :  { %1538 = vmatprep.subr.bf16.mxu0 %v2948_v57  ;;  %1710 = vmatprep.subr.bf16.mxu1 %v2950_v58  ;;  %v3046_v57 = vld [vmem:[#allocation7 + $0x3ac] ss:$16 sps:$4 sm:$0xff]   ;;  %v3041_v58 = vld [vmem:[#allocation7 + $0x3a0] ss:$16 sps:$4 sm:$0xff]  }
  0x91   :  { %1539 = vmatpush1.bf16.msra.mxu0 %v2952_v59  ;;  %1711 = vmatpush1.bf16.msra.mxu1 %v2953_v60  ;;  %v3044_v59 = vld [vmem:[#allocation7 + $0x3a8] ss:$16 sps:$4 sm:$0xff]   ;;  %v3049_v60 = vld [vmem:[#allocation7 + $0x3c4] ss:$16 sps:$4 sm:$0xff]  }
  0x92   :  { %1540 = vmatprep.subr.bf16.mxu0 %v2954_v61  ;;  %1712 = vmatprep.subr.bf16.mxu1 %v2956_v62  ;;  %v3052_v61 = vld [vmem:[#allocation7 + $0x3cc] ss:$16 sps:$4 sm:$0xff]  }
  0x94   :  { %v3243_v62 = vpop.eup %3242 }
  0x95   :  { %1541 = vmatpush1.bf16.msra.mxu0 %v2958_v63  ;;  %1713 = vmatpush1.bf16.msra.mxu1 %v2959_v0  ;;  %v3047_v63 = vld [vmem:[#allocation7 + $0x3c0] ss:$16 sps:$4 sm:$0xff]   ;;  %v3050_v0 = vld [vmem:[#allocation7 + $0x3c8] ss:$16 sps:$4 sm:$0xff]   ;;  %2846 = vpush %v3243_v62 }
  0x96   :  { %1553 = vmatprep.subr.bf16.mxu0 %v2965_v1  ;;  %1725 = vmatprep.subr.bf16.mxu1 %v2968_v2  ;;  %v3055_v1 = vld [vmem:[#allocation7 + $0x3e4] ss:$16 sps:$4 sm:$0xff]   ;;  %v3058_v2 = vld [vmem:[#allocation7 + $0x3ec] ss:$16 sps:$4 sm:$0xff]   ;;  %v3143_v62 = vld [vmem:[#allocation7 + $0x5a8] ss:$16 sps:$4 sm:$0xff]  }
  0x98   :  { %1543 = vmatmul.mubr.bf16.vlgmr.msra.gmra.mrb[0].mxu0 %v2960_v3  ;;  %1715 = vmatmul.mubr.bf16.vlgmr.msra.gmra.mrb[0].mxu1 %v2960_v3  ;;  %v3053_v3 = vld [vmem:[#allocation7 + $0x3e0] ss:$16 sps:$4 sm:$0xff]  }
  0x99   :  { %1554 = vmatpush1.bf16.msra.mxu0 %v2963_v4  ;;  %1726 = vmatpush1.bf16.msra.mxu1 %v2966_v5  ;;  %v3056_v4 = vld [vmem:[#allocation7 + $0x3e8] ss:$16 sps:$4 sm:$0xff]   ;;  %v3064_v5 = vld [vmem:[#allocation7 + $0x404] ss:$16 sps:$4 sm:$0xff]  }
  0x9a   :  { %1555 = vmatprep.subr.bf16.mxu0 %v2971_v6  ;;  %1727 = vmatprep.subr.bf16.mxu1 %v2974_v7  ;;  %v3067_v6 = vld [vmem:[#allocation7 + $0x40c] ss:$16 sps:$4 sm:$0xff]  }
  0x9b   :  { %1585 = vmatprep.mubr.bf16.mxu0 %v3061_v30  ;;  %1757 = vmatprep.mubr.bf16.mxu1 %v3061_v30  ;;  %v3059_v7 = vld [vmem:[#allocation6 + $0x8] ss:$28 sps:$4 sm:$0xff]   ;;  %v3095_v30 = vld [vmem:[#allocation7 + $0x4a8] ss:$16 sps:$4 sm:$0xff]  }
  0x9d   :  { %1556 = vmatpush1.bf16.msra.mxu0 %v2969_v8  ;;  %1728 = vmatpush1.bf16.msra.mxu1 %v2972_v9  ;;  %v3062_v8 = vld [vmem:[#allocation7 + $0x400] ss:$16 sps:$4 sm:$0xff]   ;;  %v3065_v9 = vld [vmem:[#allocation7 + $0x408] ss:$16 sps:$4 sm:$0xff]  }
  0x9e   :  { %1557 = vmatprep.subr.bf16.mxu0 %v2977_v10  ;;  %1729 = vmatprep.subr.bf16.mxu1 %v2980_v11  ;;  %v3070_v10 = vld [vmem:[#allocation7 + $0x424] ss:$16 sps:$4 sm:$0xff]   ;;  %v3073_v11 = vld [vmem:[#allocation7 + $0x42c] ss:$16 sps:$4 sm:$0xff]  }
  0xa1   :  { %1558 = vmatpush1.bf16.msra.mxu0 %v2975_v12  ;;  %1730 = vmatpush1.bf16.msra.mxu1 %v2978_v13  ;;  %v3068_v12 = vld [vmem:[#allocation7 + $0x420] ss:$16 sps:$4 sm:$0xff]   ;;  %v3071_v13 = vld [vmem:[#allocation7 + $0x428] ss:$16 sps:$4 sm:$0xff]  }
  0xa2   :  { %1559 = vmatprep.subr.bf16.mxu0 %v2983_v14  ;;  %1731 = vmatprep.subr.bf16.mxu1 %v2986_v15  ;;  %v3160_v14 = vld [vmem:[#allocation6 + $0x14] ss:$28 sps:$4 sm:$0xff]   ;;  %v3076_v15 = vld [vmem:[#allocation7 + $0x444] ss:$16 sps:$4 sm:$0xff]  }
  0xa5   :  { %1560 = vmatpush1.bf16.msra.mxu0 %v2981_v16  ;;  %1732 = vmatpush1.bf16.msra.mxu1 %v2984_v17  ;;  %v3079_v16 = vld [vmem:[#allocation7 + $0x44c] ss:$16 sps:$4 sm:$0xff]   ;;  %v3074_v17 = vld [vmem:[#allocation7 + $0x440] ss:$16 sps:$4 sm:$0xff]  }
  0xa6   :  { %1561 = vmatprep.subr.bf16.mxu0 %v2989_v18  ;;  %1733 = vmatprep.subr.bf16.mxu1 %v2992_v19  ;;  %v3077_v18 = vld [vmem:[#allocation7 + $0x448] ss:$16 sps:$4 sm:$0xff]   ;;  %v3082_v19 = vld [vmem:[#allocation7 + $0x464] ss:$16 sps:$4 sm:$0xff]  }
  0xa9   :  { %1562 = vmatpush1.bf16.msra.mxu0 %v2987_v20  ;;  %1734 = vmatpush1.bf16.msra.mxu1 %v2990_v21  ;;  %v3085_v20 = vld [vmem:[#allocation7 + $0x46c] ss:$16 sps:$4 sm:$0xff]   ;;  %v3080_v21 = vld [vmem:[#allocation7 + $0x460] ss:$16 sps:$4 sm:$0xff]  }
  0xaa   :  { %1563 = vmatprep.subr.bf16.mxu0 %v2995_v22  ;;  %1735 = vmatprep.subr.bf16.mxu1 %v2998_v23  ;;  %v3083_v22 = vld [vmem:[#allocation7 + $0x468] ss:$16 sps:$4 sm:$0xff]   ;;  %v3088_v23 = vld [vmem:[#allocation7 + $0x484] ss:$16 sps:$4 sm:$0xff]  }
  0xad   :  { %1564 = vmatpush1.bf16.msra.mxu0 %v2993_v24  ;;  %1736 = vmatpush1.bf16.msra.mxu1 %v2996_v25  ;;  %v3091_v24 = vld [vmem:[#allocation7 + $0x48c] ss:$16 sps:$4 sm:$0xff]   ;;  %v3086_v25 = vld [vmem:[#allocation7 + $0x480] ss:$16 sps:$4 sm:$0xff]  }
  0xae   :  { %1565 = vmatprep.subr.bf16.mxu0 %v3001_v26  ;;  %1737 = vmatprep.subr.bf16.mxu1 %v3004_v27  ;;  %v3089_v26 = vld [vmem:[#allocation7 + $0x488] ss:$16 sps:$4 sm:$0xff]   ;;  %v3094_v27 = vld [vmem:[#allocation7 + $0x4a4] ss:$16 sps:$4 sm:$0xff]  }
  0xb1   :  { %1566 = vmatpush1.bf16.msra.mxu0 %v2999_v28  ;;  %1738 = vmatpush1.bf16.msra.mxu1 %v3002_v29  ;;  %v3097_v28 = vld [vmem:[#allocation7 + $0x4ac] ss:$16 sps:$4 sm:$0xff]   ;;  %v3092_v29 = vld [vmem:[#allocation7 + $0x4a0] ss:$16 sps:$4 sm:$0xff]  }
  0xb2   :  { %1567 = vmatprep.subr.bf16.mxu0 %v3007_v31  ;;  %1739 = vmatprep.subr.bf16.mxu1 %v3010_v32  ;;  %v3100_v31 = vld [vmem:[#allocation7 + $0x4c4] ss:$16 sps:$4 sm:$0xff]   ;;  %v3103_v32 = vld [vmem:[#allocation7 + $0x4cc] ss:$16 sps:$4 sm:$0xff]  }
  0xb5   :  { %1568 = vmatpush1.bf16.msra.mxu0 %v3005_v33  ;;  %1740 = vmatpush1.bf16.msra.mxu1 %v3008_v34  ;;  %v3098_v33 = vld [vmem:[#allocation7 + $0x4c0] ss:$16 sps:$4 sm:$0xff]   ;;  %v3101_v34 = vld [vmem:[#allocation7 + $0x4c8] ss:$16 sps:$4 sm:$0xff]  }
  0xb6   :  { %1569 = vmatprep.subr.bf16.mxu0 %v3013_v35  ;;  %1741 = vmatprep.subr.bf16.mxu1 %v3016_v36  ;;  %v3106_v35 = vld [vmem:[#allocation7 + $0x4e4] ss:$16 sps:$4 sm:$0xff]   ;;  %v3109_v36 = vld [vmem:[#allocation7 + $0x4ec] ss:$16 sps:$4 sm:$0xff]  }
  0xb9   :  { %1570 = vmatpush1.bf16.msra.mxu0 %v3011_v37  ;;  %1742 = vmatpush1.bf16.msra.mxu1 %v3014_v38  ;;  %v3104_v37 = vld [vmem:[#allocation7 + $0x4e0] ss:$16 sps:$4 sm:$0xff]   ;;  %v3107_v38 = vld [vmem:[#allocation7 + $0x4e8] ss:$16 sps:$4 sm:$0xff]  }
  0xba   :  { %1571 = vmatprep.subr.bf16.mxu0 %v3019_v39  ;;  %1743 = vmatprep.subr.bf16.mxu1 %v3022_v40  ;;  %v3112_v39 = vld [vmem:[#allocation7 + $0x504] ss:$16 sps:$4 sm:$0xff]   ;;  %v3115_v40 = vld [vmem:[#allocation7 + $0x50c] ss:$16 sps:$4 sm:$0xff]  }
  0xbd   :  { %1572 = vmatpush1.bf16.msra.mxu0 %v3017_v41  ;;  %1744 = vmatpush1.bf16.msra.mxu1 %v3020_v42  ;;  %v3110_v41 = vld [vmem:[#allocation7 + $0x500] ss:$16 sps:$4 sm:$0xff]   ;;  %v3113_v42 = vld [vmem:[#allocation7 + $0x508] ss:$16 sps:$4 sm:$0xff]  }
  0xbe   :  { %1573 = vmatprep.subr.bf16.mxu0 %v3025_v43  ;;  %1745 = vmatprep.subr.bf16.mxu1 %v3028_v44  ;;  %v3118_v43 = vld [vmem:[#allocation7 + $0x524] ss:$16 sps:$4 sm:$0xff]   ;;  %v3121_v44 = vld [vmem:[#allocation7 + $0x52c] ss:$16 sps:$4 sm:$0xff]  }
  0xc1   :  { %1574 = vmatpush1.bf16.msra.mxu0 %v3023_v45  ;;  %1746 = vmatpush1.bf16.msra.mxu1 %v3026_v46  ;;  %v3116_v45 = vld [vmem:[#allocation7 + $0x520] ss:$16 sps:$4 sm:$0xff]   ;;  %v3119_v46 = vld [vmem:[#allocation7 + $0x528] ss:$16 sps:$4 sm:$0xff]  }
  0xc2   :  { %1575 = vmatprep.subr.bf16.mxu0 %v3031_v47  ;;  %1747 = vmatprep.subr.bf16.mxu1 %v3034_v48  ;;  %v3124_v47 = vld [vmem:[#allocation7 + $0x544] ss:$16 sps:$4 sm:$0xff]   ;;  %v3127_v48 = vld [vmem:[#allocation7 + $0x54c] ss:$16 sps:$4 sm:$0xff]  }
  0xc5   :  { %1576 = vmatpush1.bf16.msra.mxu0 %v3029_v49  ;;  %1748 = vmatpush1.bf16.msra.mxu1 %v3032_v50  ;;  %v3122_v49 = vld [vmem:[#allocation7 + $0x540] ss:$16 sps:$4 sm:$0xff]   ;;  %v3125_v50 = vld [vmem:[#allocation7 + $0x548] ss:$16 sps:$4 sm:$0xff]  }
  0xc6   :  { %1577 = vmatprep.subr.bf16.mxu0 %v3037_v51  ;;  %1749 = vmatprep.subr.bf16.mxu1 %v3040_v53  ;;  %v3130_v51 = vld [vmem:[#allocation7 + $0x564] ss:$16 sps:$4 sm:$0xff]   ;;  %v3128_v53 = vld [vmem:[#allocation7 + $0x560] ss:$16 sps:$4 sm:$0xff]   ;;  %s2847_s10 = spop %2846 }
  0xc9   :  { %1578 = vmatpush1.bf16.msra.mxu0 %v3035_v54  ;;  %1750 = vmatpush1.bf16.msra.mxu1 %v3038_v55  ;;  %v3131_v54 = vld [vmem:[#allocation7 + $0x568] ss:$16 sps:$4 sm:$0xff]   ;;  %v3136_v55 = vld [vmem:[#allocation7 + $0x584] ss:$16 sps:$4 sm:$0xff]  }
  0xca   :  { %1579 = vmatprep.subr.bf16.mxu0 %v3043_v56  ;;  %1751 = vmatprep.subr.bf16.mxu1 %v3046_v57  ;;  %v3139_v56 = vld [vmem:[#allocation7 + $0x58c] ss:$16 sps:$4 sm:$0xff]   ;;  %v3134_v57 = vld [vmem:[#allocation7 + $0x580] ss:$16 sps:$4 sm:$0xff]  }
  0xcd   :  { %1580 = vmatpush1.bf16.msra.mxu0 %v3041_v58  ;;  %1752 = vmatpush1.bf16.msra.mxu1 %v3044_v59  ;;  %v3137_v58 = vld [vmem:[#allocation7 + $0x588] ss:$16 sps:$4 sm:$0xff]   ;;  %v3142_v59 = vld [vmem:[#allocation7 + $0x5a4] ss:$16 sps:$4 sm:$0xff]  }
  0xce   :  { %1581 = vmatprep.subr.bf16.mxu0 %v3049_v60  ;;  %1753 = vmatprep.subr.bf16.mxu1 %v3052_v61  ;;  %v3145_v60 = vld [vmem:[#allocation7 + $0x5ac] ss:$16 sps:$4 sm:$0xff]   ;;  %v3140_v61 = vld [vmem:[#allocation7 + $0x5a0] ss:$16 sps:$4 sm:$0xff]  }
  0xd1   :  { %1582 = vmatpush1.bf16.msra.mxu0 %v3047_v63  ;;  %1754 = vmatpush1.bf16.msra.mxu1 %v3050_v0  ;;  %v3148_v63 = vld [vmem:[#allocation7 + $0x5c4] ss:$16 sps:$4 sm:$0xff]   ;;  %v3151_v0 = vld [vmem:[#allocation7 + $0x5cc] ss:$16 sps:$4 sm:$0xff]  }
  0xd2   :  { %1583 = vmatprep.subr.bf16.mxu0 %v3055_v1  ;;  %1755 = vmatprep.subr.bf16.mxu1 %v3058_v2  ;;  %v3146_v1 = vld [vmem:[#allocation7 + $0x5c0] ss:$16 sps:$4 sm:$0xff]   ;;  %v3149_v2 = vld [vmem:[#allocation7 + $0x5c8] ss:$16 sps:$4 sm:$0xff]  }
  0xd5   :  { %1584 = vmatpush1.bf16.msra.mxu0 %v3053_v3  ;;  %1756 = vmatpush1.bf16.msra.mxu1 %v3056_v4  ;;  %v3154_v3 = vld [vmem:[#allocation7 + $0x5e4] ss:$16 sps:$4 sm:$0xff]   ;;  %v3157_v4 = vld [vmem:[#allocation7 + $0x5ec] ss:$16 sps:$4 sm:$0xff]  }
  0xd6   :  { %1596 = vmatprep.subr.bf16.mxu0 %v3064_v5  ;;  %1768 = vmatprep.subr.bf16.mxu1 %v3067_v6  ;;  %v3152_v5 = vld [vmem:[#allocation7 + $0x5e0] ss:$16 sps:$4 sm:$0xff]   ;;  %v3155_v6 = vld [vmem:[#allocation7 + $0x5e8] ss:$16 sps:$4 sm:$0xff]  }
  0xd8   :  { %1586 = vmatmul.mubr.bf16.vlgmr.msra.gmra.mrb[0].mxu0 %v3059_v7  ;;  %1758 = vmatmul.mubr.bf16.vlgmr.msra.gmra.mrb[0].mxu1 %v3059_v7  ;;  %v3163_v7 = vld [vmem:[#allocation7 + $0x604] ss:$16 sps:$4 sm:$0xff]  }
  0xd9   :  { %1597 = vmatpush1.bf16.msra.mxu0 %v3062_v8  ;;  %1769 = vmatpush1.bf16.msra.mxu1 %v3065_v9  ;;  %v3166_v8 = vld [vmem:[#allocation7 + $0x60c] ss:$16 sps:$4 sm:$0xff]   ;;  %v3158_v9 = vld [vmem:[#allocation6 + $0x10] ss:$28 sps:$4 sm:$0xff]  }
  0xda   :  { %1598 = vmatprep.subr.bf16.mxu0 %v3070_v10  ;;  %1770 = vmatprep.subr.bf16.mxu1 %v3073_v11  ;;  %v3161_v10 = vld [vmem:[#allocation7 + $0x600] ss:$16 sps:$4 sm:$0xff]   ;;  %v3164_v11 = vld [vmem:[#allocation7 + $0x608] ss:$16 sps:$4 sm:$0xff]  }
  0xdb   :  { %1628 = vmatprep.mubr.bf16.mxu0 %v3160_v14  ;;  %1800 = vmatprep.mubr.bf16.mxu1 %v3160_v14  ;;  %v3167_v14 = vld [vmem:[#allocation7 + $0x620] ss:$16 sps:$4 sm:$0xff]  }
  0xdd   :  { %1599 = vmatpush1.bf16.msra.mxu0 %v3068_v12  ;;  %1771 = vmatpush1.bf16.msra.mxu1 %v3071_v13  ;;  %v3169_v12 = vld [vmem:[#allocation7 + $0x624] ss:$16 sps:$4 sm:$0xff]   ;;  %v3172_v13 = vld [vmem:[#allocation7 + $0x62c] ss:$16 sps:$4 sm:$0xff]  }
  0xde   :  { %1600 = vmatprep.subr.bf16.mxu0 %v3076_v15  ;;  %1772 = vmatprep.subr.bf16.mxu1 %v3079_v16  ;;  %v3170_v15 = vld [vmem:[#allocation7 + $0x628] ss:$16 sps:$4 sm:$0xff]   ;;  %v3175_v16 = vld [vmem:[#allocation7 + $0x644] ss:$16 sps:$4 sm:$0xff]  }
  0xe1   :  { %1601 = vmatpush1.bf16.msra.mxu0 %v3074_v17  ;;  %1773 = vmatpush1.bf16.msra.mxu1 %v3077_v18  ;;  %v3178_v17 = vld [vmem:[#allocation7 + $0x64c] ss:$16 sps:$4 sm:$0xff]   ;;  %v3393_v18 = vmov 0  }
  0xe2   :  { %1602 = vmatprep.subr.bf16.mxu0 %v3082_v19  ;;  %1774 = vmatprep.subr.bf16.mxu1 %v3085_v20  ;;  %v3173_v19 = vld [vmem:[#allocation7 + $0x640] ss:$16 sps:$4 sm:$0xff]   ;;  %v3176_v20 = vld [vmem:[#allocation7 + $0x648] ss:$16 sps:$4 sm:$0xff]  }
  0xe5   :  { %1603 = vmatpush1.bf16.msra.mxu0 %v3080_v21  ;;  %1775 = vmatpush1.bf16.msra.mxu1 %v3083_v22  ;;  %v3181_v21 = vld [vmem:[#allocation7 + $0x664] ss:$16 sps:$4 sm:$0xff]   ;;  %v3184_v22 = vld [vmem:[#allocation7 + $0x66c] ss:$16 sps:$4 sm:$0xff]  }
  0xe6   :  { %1604 = vmatprep.subr.bf16.mxu0 %v3088_v23  ;;  %1776 = vmatprep.subr.bf16.mxu1 %v3091_v24  ;;  %v3179_v23 = vld [vmem:[#allocation7 + $0x660] ss:$16 sps:$4 sm:$0xff]   ;;  %v3182_v24 = vld [vmem:[#allocation7 + $0x668] ss:$16 sps:$4 sm:$0xff]  }
  0xe9   :  { %1605 = vmatpush1.bf16.msra.mxu0 %v3086_v25  ;;  %1777 = vmatpush1.bf16.msra.mxu1 %v3089_v26  ;;  %v3187_v25 = vld [vmem:[#allocation7 + $0x684] ss:$16 sps:$4 sm:$0xff]   ;;  %v3190_v26 = vld [vmem:[#allocation7 + $0x68c] ss:$16 sps:$4 sm:$0xff]  }
  0xea   :  { %1606 = vmatprep.subr.bf16.mxu0 %v3094_v27  ;;  %1778 = vmatprep.subr.bf16.mxu1 %v3097_v28  ;;  %v3185_v27 = vld [vmem:[#allocation7 + $0x680] ss:$16 sps:$4 sm:$0xff]   ;;  %v3188_v28 = vld [vmem:[#allocation7 + $0x688] ss:$16 sps:$4 sm:$0xff]  }
  0xed   :  { %1607 = vmatpush1.bf16.msra.mxu0 %v3092_v29  ;;  %1779 = vmatpush1.bf16.msra.mxu1 %v3095_v30  ;;  %v3193_v29 = vld [vmem:[#allocation7 + $0x6a4] ss:$16 sps:$4 sm:$0xff]   ;;  %v3196_v30 = vld [vmem:[#allocation7 + $0x6ac] ss:$16 sps:$4 sm:$0xff]  }
  0xee   :  { %1608 = vmatprep.subr.bf16.mxu0 %v3100_v31  ;;  %1780 = vmatprep.subr.bf16.mxu1 %v3103_v32  ;;  %v3191_v31 = vld [vmem:[#allocation7 + $0x6a0] ss:$16 sps:$4 sm:$0xff]   ;;  %v3194_v32 = vld [vmem:[#allocation7 + $0x6a8] ss:$16 sps:$4 sm:$0xff]  }
  0xf1   :  { %1609 = vmatpush1.bf16.msra.mxu0 %v3098_v33  ;;  %1781 = vmatpush1.bf16.msra.mxu1 %v3101_v34  ;;  %v3199_v33 = vld [vmem:[#allocation7 + $0x6c4] ss:$16 sps:$4 sm:$0xff]   ;;  %v3202_v34 = vld [vmem:[#allocation7 + $0x6cc] ss:$16 sps:$4 sm:$0xff]  }
  0xf2   :  { %1610 = vmatprep.subr.bf16.mxu0 %v3106_v35  ;;  %1782 = vmatprep.subr.bf16.mxu1 %v3109_v36  ;;  %v3197_v35 = vld [vmem:[#allocation7 + $0x6c0] ss:$16 sps:$4 sm:$0xff]   ;;  %v3200_v36 = vld [vmem:[#allocation7 + $0x6c8] ss:$16 sps:$4 sm:$0xff]  }
  0xf5   :  { %1611 = vmatpush1.bf16.msra.mxu0 %v3104_v37  ;;  %1783 = vmatpush1.bf16.msra.mxu1 %v3107_v38  ;;  %v3205_v37 = vld [vmem:[#allocation7 + $0x6e4] ss:$16 sps:$4 sm:$0xff]   ;;  %v3208_v38 = vld [vmem:[#allocation7 + $0x6ec] ss:$16 sps:$4 sm:$0xff]  }
  0xf6   :  { %1612 = vmatprep.subr.bf16.mxu0 %v3112_v39  ;;  %1784 = vmatprep.subr.bf16.mxu1 %v3115_v40  ;;  %v3203_v39 = vld [vmem:[#allocation7 + $0x6e0] ss:$16 sps:$4 sm:$0xff]   ;;  %v3206_v40 = vld [vmem:[#allocation7 + $0x6e8] ss:$16 sps:$4 sm:$0xff]  }
  0xf9   :  { %1613 = vmatpush1.bf16.msra.mxu0 %v3110_v41  ;;  %1785 = vmatpush1.bf16.msra.mxu1 %v3113_v42  ;;  %v3209_v41 = vld [vmem:[#allocation6 + $0x18] ss:$28 sps:$4 sm:$0xff]   ;;  %v3210_v42 = vld [vmem:[#allocation10 + $0x40] sm:$0xff]  }
  0xfa   :  { %1614 = vmatprep.subr.bf16.mxu0 %v3118_v43  ;;  %1786 = vmatprep.subr.bf16.mxu1 %v3121_v44  ;;  %v3211_v43 = vld [vmem:[#allocation10 + $0xc0] sm:$0xff]  }
  0xfb   :  { %v3212_v44 = vld [vmem:[#allocation10] sm:$0xff]  }
  0xfd   :  { %1615 = vmatpush1.bf16.msra.mxu0 %v3116_v45  ;;  %1787 = vmatpush1.bf16.msra.mxu1 %v3119_v46  ;;  %v3213_v45 = vld [vmem:[#allocation10 + $0x80] sm:$0xff]   ;;  %v3214_v46 = vld [vmem:[#allocation10 + $0x48] sm:$0xff]  }
  0xfe   :  { %1616 = vmatprep.subr.bf16.mxu0 %v3124_v47  ;;  %1788 = vmatprep.subr.bf16.mxu1 %v3127_v48  ;;  %v3215_v47 = vld [vmem:[#allocation10 + $0xc8] sm:$0xff]  }
  0xff   :  { %v3216_v48 = vld [vmem:[#allocation10 + $0x8] sm:$0xff]  }
 0x101   :  { %1617 = vmatpush1.bf16.msra.mxu0 %v3122_v49  ;;  %1789 = vmatpush1.bf16.msra.mxu1 %v3125_v50  ;;  %v3217_v49 = vld [vmem:[#allocation10 + $0x88] sm:$0xff]   ;;  %v3218_v50 = vld [vmem:[#allocation10 + $0x50] sm:$0xff]  }
 0x102   :  { %1618 = vmatprep.subr.bf16.mxu0 %v3130_v51  ;;  %1790 = vmatprep.subr.bf16.mxu1 %v3133_v52  ;;  %v3219_v51 = vld [vmem:[#allocation10 + $0xd0] sm:$0xff]  }
 0x103   :  { %v3220_v52 = vld [vmem:[#allocation10 + $0x10] sm:$0xff]  }
 0x105   :  { %1619 = vmatpush1.bf16.msra.mxu0 %v3128_v53  ;;  %1791 = vmatpush1.bf16.msra.mxu1 %v3131_v54  ;;  %v3221_v53 = vld [vmem:[#allocation10 + $0x90] sm:$0xff]   ;;  %v3222_v54 = vld [vmem:[#allocation10 + $0x58] sm:$0xff]  }
 0x106   :  { %1620 = vmatprep.subr.bf16.mxu0 %v3136_v55  ;;  %1792 = vmatprep.subr.bf16.mxu1 %v3139_v56  ;;  %v3223_v55 = vld [vmem:[#allocation10 + $0xd8] sm:$0xff]  }
 0x107   :  { %v3224_v56 = vld [vmem:[#allocation10 + $0x18] sm:$0xff]  }
 0x109   :  { %1621 = vmatpush1.bf16.msra.mxu0 %v3134_v57  ;;  %1793 = vmatpush1.bf16.msra.mxu1 %v3137_v58  ;;  %v3225_v57 = vld [vmem:[#allocation10 + $0x98] sm:$0xff]   ;;  %v3226_v58 = vld [vmem:[#allocation10 + $0x60] sm:$0xff]  }
 0x10a   :  { %1622 = vmatprep.subr.bf16.mxu0 %v3142_v59  ;;  %1794 = vmatprep.subr.bf16.mxu1 %v3145_v60  ;;  %v3227_v59 = vld [vmem:[#allocation10 + $0xe0] sm:$0xff]  }
 0x10b   :  { %v3228_v60 = vld [vmem:[#allocation10 + $0x20] sm:$0xff]  }
 0x10d   :  { %1623 = vmatpush1.bf16.msra.mxu0 %v3140_v61  ;;  %1795 = vmatpush1.bf16.msra.mxu1 %v3143_v62  ;;  %v3229_v61 = vld [vmem:[#allocation10 + $0xa0] sm:$0xff]   ;;  %v3230_v62 = vld [vmem:[#allocation10 + $0x68] sm:$0xff]  }
 0x10e   :  { %1624 = vmatprep.subr.bf16.mxu0 %v3148_v63  ;;  %1796 = vmatprep.subr.bf16.mxu1 %v3151_v0  ;;  %v3231_v63 = vld [vmem:[#allocation10 + $0xe8] sm:$0xff]  }
 0x10f   :  { %v3232_v0 = vld [vmem:[#allocation10 + $0x28] sm:$0xff]  }
 0x111   :  { %1625 = vmatpush1.bf16.msra.mxu0 %v3146_v1  ;;  %1797 = vmatpush1.bf16.msra.mxu1 %v3149_v2  ;;  %v3233_v1 = vld [vmem:[#allocation10 + $0xa8] sm:$0xff]   ;;  %v3234_v2 = vld [vmem:[#allocation10 + $0x70] sm:$0xff]  }
 0x112   :  { %1626 = vmatprep.subr.bf16.mxu0 %v3154_v3  ;;  %1798 = vmatprep.subr.bf16.mxu1 %v3157_v4  ;;  %v3235_v3 = vld [vmem:[#allocation10 + $0xf0] sm:$0xff]  }
 0x113   :  { %v3236_v4 = vld [vmem:[#allocation10 + $0x30] sm:$0xff]  }
 0x115   :  { %1627 = vmatpush1.bf16.msra.mxu0 %v3152_v5  ;;  %1799 = vmatpush1.bf16.msra.mxu1 %v3155_v6  ;;  %v3237_v5 = vld [vmem:[#allocation10 + $0xb0] sm:$0xff]   ;;  %v3238_v6 = vld [vmem:[#allocation10 + $0x78] sm:$0xff]  }
 0x116   :  { %1639 = vmatprep.subr.bf16.mxu0 %v3163_v7  ;;  %1811 = vmatprep.subr.bf16.mxu1 %v3166_v8  ;;  %v3239_v7 = vld [vmem:[#allocation10 + $0xf8] sm:$0xff]  }
 0x117   :  { %v3240_v8 = vld [vmem:[#allocation10 + $0x38] sm:$0xff]  }
 0x118   :  { %1629 = vmatmul.mubr.bf16.vlgmr.msra.gmra.mrb[0].mxu0 %v3158_v9  ;;  %1801 = vmatmul.mubr.bf16.vlgmr.msra.gmra.mrb[0].mxu1 %v3158_v9  ;;  %v3241_v9 = vld [vmem:[#allocation10 + $0xb8] sm:$0xff]  }
 0x119   :  { %1640 = vmatpush1.bf16.msra.mxu0 %v3161_v10  ;;  %1812 = vmatpush1.bf16.msra.mxu1 %v3164_v11  ;;  %v334_v10 = vlaneseq }
 0x11a   :  { %1641 = vmatprep.subr.bf16.mxu0 %v3169_v12  ;;  %1813 = vmatprep.subr.bf16.mxu1 %v3172_v13 }
 0x11b   :  { %1671 = vmatprep.mubr.bf16.mxu0 %v3393_v18  ;;  %1843 = vmatprep.mubr.bf16.mxu1 %v3393_v18  ;;  %v3496_v11 = vshrl.u32 %v334_v10, 7 }
 0x11d   :  { %1642 = vmatpush1.bf16.msra.mxu0 %v3167_v14  ;;  %1814 = vmatpush1.bf16.msra.mxu1 %v3170_v15  ;;  %v3501_v12 = vsub.s32 0, %v3496_v11  ;;  %v3504_v13 = vsub.s32 2, %v3496_v11  ;;  %v96_v14 = vld [vmem:[#allocation9] ss:$4 sm:$0xf]  ;;  %v3507_v15 = vsub.s32 1, %v3496_v11 }
 0x11e   :  { %1643 = vmatprep.subr.bf16.mxu0 %v3175_v16  ;;  %1815 = vmatprep.subr.bf16.mxu1 %v3178_v17  ;;  %v3510_v16 = vsub.s32 3, %v3496_v11  ;;  %v1940_v10 = vadd.s32 8, %v3496_v11 }
 0x11f   :  { %v337_v17 = vrot.slane %v96_v14, %v3501_v12  ;;  %v345_v18 = vrot.slane %v96_v14, %v3504_v13 }
 0x121   :  { %1644 = vmatpush1.bf16.msra.mxu0 %v3173_v19  ;;  %1816 = vmatpush1.bf16.msra.mxu1 %v3176_v20 }
 0x122   :  { %1645 = vmatprep.subr.bf16.mxu0 %v3181_v21  ;;  %1817 = vmatprep.subr.bf16.mxu1 %v3184_v22  ;;  %v341_v21 = vrot.slane %v96_v14, %v3507_v15  ;;  %v349_v22 = vrot.slane %v96_v14, %v3510_v16 }
 0x125   :  { %1646 = vmatpush1.bf16.msra.mxu0 %v3179_v23  ;;  %1818 = vmatpush1.bf16.msra.mxu1 %v3182_v24 }
 0x126   :  { %1647 = vmatprep.subr.bf16.mxu0 %v3187_v25  ;;  %1819 = vmatprep.subr.bf16.mxu1 %v3190_v26 }
 0x129   :  { %1648 = vmatpush1.bf16.msra.mxu0 %v3185_v27  ;;  %1820 = vmatpush1.bf16.msra.mxu1 %v3188_v28 }
 0x12a   :  { %1649 = vmatprep.subr.bf16.mxu0 %v3193_v29  ;;  %1821 = vmatprep.subr.bf16.mxu1 %v3196_v30 }
 0x12d   :  { %1650 = vmatpush1.bf16.msra.mxu0 %v3191_v31  ;;  %1822 = vmatpush1.bf16.msra.mxu1 %v3194_v32 }
 0x12e   :  { %1651 = vmatprep.subr.bf16.mxu0 %v3199_v33  ;;  %1823 = vmatprep.subr.bf16.mxu1 %v3202_v34 }
 0x131   :  { %1652 = vmatpush1.bf16.msra.mxu0 %v3197_v35  ;;  %1824 = vmatpush1.bf16.msra.mxu1 %v3200_v36 }
 0x132   :  { %1653 = vmatprep.subr.bf16.mxu0 %v3205_v37  ;;  %1825 = vmatprep.subr.bf16.mxu1 %v3208_v38 }
 0x135   :  { %1654 = vmatpush1.bf16.msra.mxu0 %v3203_v39  ;;  %1826 = vmatpush1.bf16.msra.mxu1 %v3206_v40 }
 0x136   :  { %2770 = vmatprep.subr.bf16.mxu0 %v3210_v42  ;;  %2792 = vmatprep.subr.bf16.mxu1 %v3211_v43  ;;  %v1882_v43 = vstv %s91_s9 }
 0x138   :  { %1672 = vmatmul.mubr.bf16.vlgmr.msra.gmra.mrb[0].mxu0 %v3209_v41  ;;  %1844 = vmatmul.mubr.bf16.vlgmr.msra.gmra.mrb[0].mxu1 %v3209_v41 }
 0x139   :  { %2771 = vmatpush3.bf16.msra.mxu0 %v3212_v44  ;;  %2793 = vmatpush3.bf16.msra.mxu1 %v3213_v45 }
 0x13a   :  { %2772 = vmatprep.subr.bf16.mxu0 %v3214_v46  ;;  %2794 = vmatprep.subr.bf16.mxu1 %v3215_v47 }
 0x13d   :  { %2773 = vmatpush3.bf16.msra.mxu0 %v3216_v48  ;;  %2795 = vmatpush3.bf16.msra.mxu1 %v3217_v49 }
 0x13e   :  { %2774 = vmatprep.subr.bf16.mxu0 %v3218_v50  ;;  %2796 = vmatprep.subr.bf16.mxu1 %v3219_v51  ;;  %v1883_v50 = vmul.f32 %v1882_v43, %v96_v14 }
 0x141   :  { %2775 = vmatpush3.bf16.msra.mxu0 %v3220_v52  ;;  %2797 = vmatpush3.bf16.msra.mxu1 %v3221_v53 }
 0x142   :  { %2776 = vmatprep.subr.bf16.mxu0 %v3222_v54  ;;  %2798 = vmatprep.subr.bf16.mxu1 %v3223_v55 }
 0x145   :  { %2777 = vmatpush3.bf16.msra.mxu0 %v3224_v56  ;;  %2799 = vmatpush3.bf16.msra.mxu1 %v3225_v57 }
 0x146   :  { %2778 = vmatprep.subr.bf16.mxu0 %v3226_v58  ;;  %2800 = vmatprep.subr.bf16.mxu1 %v3227_v59 }
 0x149   :  { %2779 = vmatpush3.bf16.msra.mxu0 %v3228_v60  ;;  %2801 = vmatpush3.bf16.msra.mxu1 %v3229_v61  ;;  %v1888_v60 = vrot.slane %v1883_v50, %v3501_v12 }
 0x14a   :  { %2780 = vmatprep.subr.bf16.mxu0 %v3230_v62  ;;  %2802 = vmatprep.subr.bf16.mxu1 %v3231_v63  ;;  %v1896_v62 = vrot.slane %v1883_v50, %v3504_v13 }
 0x14d   :  { %2781 = vmatpush3.bf16.msra.mxu0 %v3232_v0  ;;  %2803 = vmatpush3.bf16.msra.mxu1 %v3233_v1  ;;  %v1892_v0 = vrot.slane %v1883_v50, %v3507_v15 }
 0x14e   :  { %2782 = vmatprep.subr.bf16.mxu0 %v3234_v2  ;;  %2804 = vmatprep.subr.bf16.mxu1 %v3235_v3  ;;  %v1900_v2 = vrot.slane %v1883_v50, %v3510_v16 }
 0x151   :  { %2783 = vmatpush3.bf16.msra.mxu0 %v3236_v4  ;;  %2805 = vmatpush3.bf16.msra.mxu1 %v3237_v5 }
 0x152   :  { %2784 = vmatprep.subr.bf16.mxu0 %v3238_v6  ;;  %2806 = vmatprep.subr.bf16.mxu1 %v3239_v7  ;;  %v3545_v7 = vstv %s2847_s10 }
 0x155   :  { %2785 = vmatpush3.bf16.msra.mxu0 %v3240_v8  ;;  %2807 = vmatpush3.bf16.msra.mxu1 %v3241_v9 }
 0x20b   :  { %v1673_v19 = vpop.f32.mrb[0].mxu0  ;;  %v1845_v20 = vpop.f32.mrb[0].mxu1 }
 0x20c   :  { %v1675_v23 = vpop.f32.mrb[1].mxu0  ;;  %v1847_v24 = vpop.f32.mrb[1].mxu1  ;;  %v3516_v27 = vadd.f32 %v1673_v19, %v337_v17  ;;  %v3518_v28 = vadd.f32 %v1845_v20, %v345_v18 }
 0x20d   :  { %v1677_v25 = vpop.f32.mrb[2].mxu0  ;;  %v1849_v26 = vpop.f32.mrb[2].mxu1  ;;  %v3525_v33 = vadd.f32 %v1675_v23, %v341_v21  ;;  %v3527_v34 = vadd.f32 %v1847_v24, %v349_v22 }
 0x20e   :  { %v3520_v29 = vadd.f32 %v1677_v25, %v337_v17  ;;  %v3522_v30 = vadd.f32 %v1849_v26, %v345_v18  ;;  %v1679_v31 = vpop.f32.mrb[3].mxu0  ;;  %v1851_v32 = vpop.f32.mrb[3].mxu1  ;;  %v1941_v18 = vstv %s3493_s4 }
 0x20f   :  { %v3529_v35 = vadd.f32 %v1679_v31, %v341_v21  ;;  %v3531_v36 = vadd.f32 %v1851_v32, %v349_v22  ;;  %vm3566_vm0 = vcmp.lt.s32.totalorder %v3496_v11, %v1941_v18  ;;  %vm3570_vm1 = vcmp.lt.s32.totalorder %v1940_v10, %v1941_v18 }
 0x210   :  { %v1854_v37 = vadd.f32 %v3520_v29, %v3516_v27  ;;  %v1868_v38 = vadd.f32 %v3522_v30, %v3518_v28 }
 0x211   :  { %v1861_v39 = vadd.f32 %v3529_v35, %v3525_v33  ;;  %v1875_v40 = vadd.f32 %v3531_v36, %v3527_v34 }
 0x212   :  { %v1855_v41 = vrot.slane %v1854_v37, 4  ;;  %v1869_v42 = vrot.slane %v1868_v38, 4 }
 0x213   :  { %v1862_v44 = vrot.slane %v1861_v39, 4  ;;  %v1876_v45 = vrot.slane %v1875_v40, 4 }
 0x214   :  { %v1856_v46 = vadd.f32 %v1855_v41, %v1854_v37  ;;  %v1870_v47 = vadd.f32 %v1869_v42, %v1868_v38 }
 0x215   :  { %v1863_v48 = vadd.f32 %v1862_v44, %v1861_v39  ;;  %v1877_v49 = vadd.f32 %v1876_v45, %v1875_v40 }
 0x216   :  { %v1857_v51 = vrot.slane %v1856_v46, 2  ;;  %v1871_v52 = vrot.slane %v1870_v47, 2 }
 0x217   :  { %v1864_v53 = vrot.slane %v1863_v48, 2  ;;  %v1878_v54 = vrot.slane %v1877_v49, 2 }
 0x218   :  { %v1858_v55 = vadd.f32 %v1857_v51, %v1856_v46  ;;  %v1872_v56 = vadd.f32 %v1871_v52, %v1870_v47 }
 0x219   :  { %v1865_v57 = vadd.f32 %v1864_v53, %v1863_v48  ;;  %v1879_v58 = vadd.f32 %v1878_v54, %v1877_v49 }
 0x21a   :  { %v1859_v59 = vrot.slane %v1858_v55, 1  ;;  %v1873_v61 = vrot.slane %v1872_v56, 1 }
 0x21b   :  { %v1866_v63 = vrot.slane %v1865_v57, 1  ;;  %v1880_v1 = vrot.slane %v1879_v58, 1 }
 0x21c   :  { %v1860_v3 = vadd.f32 %v1859_v59, %v1858_v55  ;;  %v1874_v4 = vadd.f32 %v1873_v61, %v1872_v56 }
 0x21d   :  { %v1867_v5 = vadd.f32 %v1866_v63, %v1865_v57  ;;  %v1881_v6 = vadd.f32 %v1880_v1, %v1879_v58 }
 0x21e   :  { %v1905_v8 = vsub.f32 %v1860_v3, %v1888_v60  ;;  %v1907_v9 = vsub.f32 %v1874_v4, %v1896_v62 }
 0x21f   :  { %v1906_v14 = vsub.f32 %v1867_v5, %v1892_v0  ;;  %v1908_v17 = vsub.f32 %v1881_v6, %v1900_v2 }
 0x220   :  { %v3550_v19 = vmul.f32 %v3545_v7, %v1905_v8  ;;  %v3553_v20 = vmul.f32 %v3545_v7, %v1907_v9 }
 0x221   :  { %v3556_v21 = vmul.f32 %v3545_v7, %v1906_v14  ;;  %v3559_v22 = vmul.f32 %v3545_v7, %v1908_v17 }
 0x222   :  { %v1917_v23 = vrot.slane %v3550_v19, %v3501_v12  ;;  %v1925_v24 = vrot.slane %v3553_v20, %v3501_v12 }
 0x223   :  { %v1921_v31 = vrot.slane %v3556_v21, %v3501_v12  ;;  %v1929_v32 = vrot.slane %v3559_v22, %v3501_v12 }
 0x224   :  { %v1930_v37 = vsub.f32 %v3516_v27, %v1917_v23  ;;  %v1932_v38 = vsub.f32 %v3518_v28, %v1925_v24  ;;  %v1934_v39 = vsub.f32 %v3520_v29, %v1917_v23  ;;  %v1936_v40 = vsub.f32 %v3522_v30, %v1925_v24 }
 0x225   :  { %v1931_v41 = vsub.f32 %v3525_v33, %v1921_v31  ;;  %v1933_v42 = vsub.f32 %v3527_v34, %v1929_v32  ;;  %v1935_v43 = vsub.f32 %v3529_v35, %v1921_v31  ;;  %v1937_v44 = vsub.f32 %v3531_v36, %v1929_v32 }
 0x226   :  { %v1944_v45 = vmul.f32 %v1930_v37, %v1930_v37  ;;  %v1946_v46 = vmul.f32 %v1932_v38, %v1932_v38  ;;  %v1948_v47 = vmul.f32 %v1934_v39, %v1934_v39  ;;  %v1950_v48 = vmul.f32 %v1936_v40, %v1936_v40 }
 0x227   :  { %v1945_v49 = vmul.f32 %v1931_v41, %v1931_v41  ;;  %v1947_v50 = vmul.f32 %v1933_v42, %v1933_v42  ;;  %v1949_v51 = vmul.f32 %v1935_v43, %v1935_v43  ;;  %v1951_v52 = vmul.f32 %v1937_v44, %v1937_v44 }
 0x228   :  { %v1956_v53 = vsel %vm3566_vm0, %v1944_v45, 0.0  ;;  %v1958_v54 = vsel %vm3566_vm0, %v1946_v46, 0.0  ;;  %v1960_v55 = vsel %vm3570_vm1, %v1948_v47, 0.0  ;;  %v1962_v56 = vsel %vm3570_vm1, %v1950_v48, 0.0 }
 0x229   :  { %v1957_v57 = vsel %vm3566_vm0, %v1945_v49, 0.0  ;;  %v1959_v58 = vsel %vm3566_vm0, %v1947_v50, 0.0  ;;  %v1961_v59 = vsel %vm3570_vm1, %v1949_v51, 0.0  ;;  %v1963_v60 = vsel %vm3570_vm1, %v1951_v52, 0.0 }
 0x22a   :  { %v1964_v61 = vadd.f32 %v1960_v55, %v1956_v53  ;;  %v1971_v62 = vadd.f32 %v1961_v59, %v1957_v57  ;;  %v1978_v63 = vadd.f32 %v1962_v56, %v1958_v54  ;;  %v1985_v0 = vadd.f32 %v1963_v60, %v1959_v58 }
 0x22b   :  { %v3394_v51 = vmov 1966171168  }
 0x22c   :  { %v1965_v1 = vrot.slane %v1964_v61, 4  ;;  %v1972_v2 = vrot.slane %v1971_v62, 4  ;;  %v1979_v3 = vrot.slane %v1978_v63, 4  ;;  %v1986_v4 = vrot.slane %v1985_v0, 4 }
 0x22d   :  { %v2011_v52 = vunpack.c.l.s4 %v3394_v51 }
 0x22e   :  { %v1966_v5 = vadd.f32 %v1965_v1, %v1964_v61  ;;  %v1973_v6 = vadd.f32 %v1972_v2, %v1971_v62  ;;  %v1980_v8 = vadd.f32 %v1979_v3, %v1978_v63  ;;  %v1987_v9 = vadd.f32 %v1986_v4, %v1985_v0  ;;  %v98_v63 = vld [vmem:[#allocation9 + $0x1] ss:$4 sm:$0xf] }
 0x22f   :  { %v2012_v53 = vunpack.c.0.s8 %v2011_v52 }
 0x230   :  { %v1967_v10 = vrot.slane %v1966_v5, 2  ;;  %v1974_v14 = vrot.slane %v1973_v6, 2  ;;  %v1981_v17 = vrot.slane %v1980_v8, 2  ;;  %v1988_v18 = vrot.slane %v1987_v9, 2 }
 0x231   :  { %v2015_v55 = vsub.s32 %v2012_v53, %v3496_v11  ;;  %v2737_v53 = vld [vmem:[%s3647_s5] ss:$0 sm:$0xff]  ;;  %s3350_s5 = scalar_lea.vmem %s2491_s14, 256 }
 0x232   :  { %v1968_v23 = vadd.f32 %v1967_v10, %v1966_v5  ;;  %v1975_v24 = vadd.f32 %v1974_v14, %v1973_v6  ;;  %v1982_v25 = vadd.f32 %v1981_v17, %v1980_v8  ;;  %v1989_v26 = vadd.f32 %v1988_v18, %v1987_v9  ;;  %p3351_p7 = scmp.ne.s32.totalorder %s2491_s14, %s3350_s5  ;;  %p3356_p9 = scmp.lt.s32.totalorder %s3350_s5, %s3350_s5 }
 0x234   :  { %v1969_v31 = vrot.slane %v1968_v23, 1  ;;  %v1976_v32 = vrot.slane %v1975_v24, 1  ;;  %v1983_v37 = vrot.slane %v1982_v25, 1  ;;  %v1990_v38 = vrot.slane %v1989_v26, 1  ;;  %p3357_p10 = por %p3356_p9, %p3355_p8 }
 0x236   :  { %v1970_v39 = vadd.f32 %v1969_v31, %v1968_v23  ;;  %v1977_v40 = vadd.f32 %v1976_v32, %v1975_v24  ;;  %v1984_v41 = vadd.f32 %v1983_v37, %v1982_v25  ;;  %v1991_v42 = vadd.f32 %v1990_v38, %v1989_v26  ;;  %v100_v24 = vld [vmem:[#allocation9 + $0x2] ss:$4 sm:$0xf]  ;;  %p3358_p11 = pnand %p3357_p10, %p3351_p7 }
 0x238   :  { %v1992_v43 = vmul.f32 %v1970_v39, %v3545_v7  ;;  %v1993_v44 = vmul.f32 %v1977_v40, %v3545_v7  ;;  %v1994_v45 = vmul.f32 %v1984_v41, %v3545_v7  ;;  %v1995_v46 = vmul.f32 %v1991_v42, %v3545_v7 }
 0x23a   :  { %v1996_v47 = vadd.f32 1e-05, %v1992_v43  ;;  %v1997_v48 = vadd.f32 1e-05, %v1993_v44  ;;  %v1998_v49 = vadd.f32 1e-05, %v1994_v45 }
 0x23b   :  { %v1999_v50 = vadd.f32 1e-05, %v1995_v46 }
 0x23c   :  { %3244 = vrsqrt.f32 %v1996_v47 }
 0x23d   :  { %3246 = vrsqrt.f32 %v1997_v48 }
 0x23e   :  { %3248 = vrsqrt.f32 %v1998_v49 }
 0x23f   :  { %3250 = vrsqrt.f32 %v1999_v50 }
 0x246   :  { %v3245_v54 = vpop.eup %3244 }
 0x247   :  { %v3247_v56 = vpop.eup %3246 }
 0x248   :  { %v3249_v57 = vpop.eup %3248  ;;  %v2008_v58 = vcombine.low %v3245_v54, %v3247_v56 }
 0x249   :  { %v3251_v59 = vpop.eup %3250 }
 0x24a   :  { %v2009_v60 = vcombine.low %v3249_v57, %v3251_v59  ;;  %v2016_v7 = vrot.slane %v2008_v58, %v2015_v55 }
 0x24c   :  { %v2023_v61 = vrot.slane %v2009_v60, %v2015_v55 }
 0x24e   :  { %v2024_v62 = vcombine.low %v2016_v7, %v2023_v61 }
 0x250   :  { %v2031_v0 = vrot.slane %v2024_v62, %v2015_v55 }
 0x252   :  { %v2033_v1 = vmul.f32 %v2031_v0, %v98_v63 }
 0x254   :  { %v2038_v2 = vrot.slane %v2033_v1, %v3501_v12  ;;  %v2046_v3 = vrot.slane %v2033_v1, %v3504_v13  ;;  %v2050_v4 = vrot.slane %v2033_v1, %v3510_v16  ;;  %v2042_v5 = vrot.slane %v2033_v1, %v3507_v15 }
 0x256   :  { %v2055_v11 = vmul.f32 %v2038_v2, %v3550_v19  ;;  %v2057_v6 = vmul.f32 %v2046_v3, %v3553_v20  ;;  %v2058_v8 = vmul.f32 %v2050_v4, %v3559_v22  ;;  %v2056_v9 = vmul.f32 %v2042_v5, %v3556_v21 }
 0x257   :  { %v2090_v31 = vmul.f32 %v3525_v33, %v2042_v5  ;;  %v2094_v32 = vmul.f32 %v3529_v35, %v2042_v5  ;;  %v2092_v19 = vmul.f32 %v3527_v34, %v2050_v4  ;;  %v2096_v20 = vmul.f32 %v3531_v36, %v2050_v4 }
 0x258   :  { %v2064_v10 = vcombine.low %v2057_v6, %v2058_v8  ;;  %v2063_v14 = vcombine.low %v2055_v11, %v2056_v9  ;;  %v2089_v39 = vmul.f32 %v3516_v27, %v2038_v2  ;;  %v2093_v40 = vmul.f32 %v3520_v29, %v2038_v2 }
 0x259   :  { %v2091_v33 = vmul.f32 %v3518_v28, %v2046_v3  ;;  %v2095_v35 = vmul.f32 %v3522_v30, %v2046_v3 }
 0x25a   :  { %v2078_v17 = vrot.slane %v2064_v10, %v2015_v55  ;;  %v2071_v18 = vrot.slane %v2063_v14, %v2015_v55 }
 0x25c   :  { %v2079_v23 = vcombine.low %v2071_v18, %v2078_v17 }
 0x25e   :  { %v2086_v25 = vrot.slane %v2079_v23, %v2015_v55 }
 0x260   :  { %v2088_v26 = vsub.f32 %v100_v24, %v2086_v25 }
 0x262   :  { %v2105_v22 = vrot.slane %v2088_v26, %v3507_v15  ;;  %v2113_v21 = vrot.slane %v2088_v26, %v3510_v16  ;;  %v2101_v37 = vrot.slane %v2088_v26, %v3501_v12  ;;  %v2109_v38 = vrot.slane %v2088_v26, %v3504_v13 }
 0x264   :  { %v2119_v41 = vadd.f32 %v2105_v22, %v2090_v31  ;;  %v2123_v34 = vadd.f32 %v2105_v22, %v2094_v32  ;;  %v2121_v42 = vadd.f32 %v2113_v21, %v2092_v19  ;;  %v2125_v36 = vadd.f32 %v2113_v21, %v2096_v20 }
 0x265   :  { %v2118_v43 = vadd.f32 %v2101_v37, %v2089_v39  ;;  %v2122_v15 = vadd.f32 %v2101_v37, %v2093_v40  ;;  %v2120_v44 = vadd.f32 %v2109_v38, %v2091_v33  ;;  %v2124_v16 = vadd.f32 %v2109_v38, %v2095_v35 }
 0x266   :  { %v2127_v45 = vmax.f32 %v2119_v41, 0.0  ;;  %v2131_v12 = vmax.f32 %v2123_v34, 0.0  ;;  %v2129_v46 = vmax.f32 %v2121_v42, 0.0  ;;  %v2133_v13 = vmax.f32 %v2125_v36, 0.0 }
 0x267   :  { %v2126_v47 = vmax.f32 %v2118_v43, 0.0  ;;  %v2130_v27 = vmax.f32 %v2122_v15, 0.0  ;;  %v2128_v48 = vmax.f32 %v2120_v44, 0.0  ;;  %v2132_v29 = vmax.f32 %v2124_v16, 0.0 }
 0x268   :  { %v2135_v49 = vpack.c.bf16 %v2131_v12, %v2127_v45  ;;  %v2137_v28 = vpack.c.bf16 %v2133_v13, %v2129_v46 }
 0x269   :  { %v2134_v50 = vpack.c.bf16 %v2130_v27, %v2126_v47  ;;  %v2136_v30 = vpack.c.bf16 %v2132_v29, %v2128_v48 }
 0x26a   :  { %2433 = vmatprep.mubr.bf16.mxu0 %v2135_v49  ;;  %2474 = vmatprep.mubr.bf16.mxu1 %v2137_v28 }
 0x26b   :  { %2434 = vmatmul.mubr.bf16.vlgmr.msra.gmra.mrb[4].mxu0 %v2134_v50  ;;  %2475 = vmatmul.mubr.bf16.vlgmr.msra.gmra.mrb[4].mxu1 %v2136_v30 }
 0x33e   :  { %v2786_v51 = vpop.f32.mrb[4].mxu0  ;;  %v2808_v52 = vpop.f32.mrb[4].mxu1 }
 0x33f   :  { %v2787_v54 = vpop.f32.mrb[5].mxu0  ;;  %v2809_v55 = vpop.f32.mrb[5].mxu1 }
 0x340   :  { %v2788_v56 = vadd.f32 %v2787_v54, %v2786_v51  ;;  %v2810_v57 = vadd.f32 %v2809_v55, %v2808_v52  ;;  %v2789_v58 = vpop.f32.mrb[6].mxu0  ;;  %v2811_v59 = vpop.f32.mrb[6].mxu1 }
 0x341   :  { %v2790_v60 = vpop.f32.mrb[7].mxu0  ;;  %v2812_v7 = vpop.f32.mrb[7].mxu1 }
 0x342   :  { %v2436_v61 = vadd.f32 %v2788_v56, %v2737_v53  ;;  %v2791_v62 = vadd.f32 %v2790_v60, %v2789_v58  ;;  %v2813_v63 = vadd.f32 %v2812_v7, %v2811_v59 }
 0x344   :  { %v2477_v0 = vadd.f32 %v2810_v57, %v2436_v61  ;;  %v2439_v1 = vadd.f32 %v2791_v62, %v2737_v53 }
 0x346   :  { %2483 = vst [vmem:[#allocation12] sm:$0xff] %v2477_v0  ;;  %v2480_v2 = vadd.f32 %v2813_v63, %v2439_v1 }
 0x348   :  { %2484 = vst [vmem:[#allocation12 + $0x8] sm:$0xff] %v2480_v2 }
 0x349   :  { %3361 = shalt.err (!%p3358_p11)
}
 0x34a   :  { %s3362_s17 = scalar_lea.hbm %s3648_s6, 256 }
 0x34b   :  { %p3363_p12 = scmp.ne.s32.totalorder %s3648_s6, %s3362_s17  ;;  %p3366_p13 = scmp.lt.u32.totalorder %s3362_s17, %s3648_s6 }
 0x34d   :  { %p3368_p0 = pnand %p3366_p13, %p3363_p12 }
 0x34f   :  { %3371 = shalt.err (!%p3368_p0)
}
 0x350   :  { %s3396_s2 = smov 128   ;;  %s3397_s21 = smov 8  }
 0x351   :  { %2496 = dma.vmem_to_hbm [thread:$0]  %s2491_s14, 256, %s3648_s6, [#allocation4], %s3396_s2, %s3396_s2, %s3397_s21  }
 0x352   :  { %3380 = dma.done.wait [#allocation4], 256  }
 0x353   :  { %3381 = vsyncadd [#allocation4], 4294967040 }
 0x354   :  { %2500 = vsyncpa [#allocation3], 1 }
 0x355   :  { %2501 = vsyncpa [#allocation8], 1 }
 0x356   :  { %2502 = vsyncpa [#allocation11], 1 }
 0x357   :  { %2503 = vsyncpa [#allocation4], 1 }
 0x358   :  { %2504 = vsyncpa [#allocation5], 1 }

</bundles_post_ra>
